<compile_context>
chip_gen: v5e
topology: v5e:2x2
jax: 0.10.0
libtpu: 0.0.40
codegen_flags: <defaults>
</compile_context>

<pallas_src>
import math

import jax
import jax.numpy as jnp
from jax import lax
from jax.experimental import pallas as pl
from jax.experimental.pallas import tpu as pltpu

# ----------------------------- configuration --------------------------------
BATCH    = 2
SEQ      = 8
ROWS     = BATCH * SEQ          # flattened (batch, seq) rows per encoder
HIDDEN   = 32
HEADS    = 4
HEAD_DIM = HIDDEN // HEADS
FFN      = 64
LATENT   = 16
LAYERS   = 2
VOCAB    = 64
NEG_INF  = -1e9
LN_EPS   = 1e-12


def _layernorm(x, gamma, beta, eps=LN_EPS):
    mu = jnp.mean(x, axis=-1, keepdims=True)
    var = jnp.mean(jnp.square(x - mu), axis=-1, keepdims=True)
    return (x - mu) * lax.rsqrt(var + eps) * gamma + beta


# --------------------- fused dual-encoder Pallas kernel ----------------------
# grid = (encoder e in {protein, text}, layer l).  The hidden state lives in a
# VMEM scratch across the layer axis; output is written only at the last layer.
def fused_encoder_kernel(ids_ref, bias_ref, tok_ref, emb_ref,
                         wqkv_ref, wo_ref, w1_ref, w2_ref, vec_ref, b1_ref,
                         wp_ref, bp_ref, wl_ref, bl_ref,
                         out_ref, x_scr):
    l = pl.program_id(1)

    # ----- l == 0: fused embedding lookup (one-hot matmul) + embedding LN -----
    @pl.when(l == 0)
    def _embed():
        ids = ids_ref[0]                                          # (ROWS, 1) int32
        one_hot = jnp.where(
            ids == lax.broadcasted_iota(jnp.int32, (ROWS, VOCAB), 1),
            1.0, 0.0).astype(jnp.bfloat16)
        x0 = jnp.dot(one_hot, tok_ref[0],
                     preferred_element_type=jnp.float32)
        emb = emb_ref[0]                                          # (ROWS+2, H)
        x0 = x0 + emb[:ROWS, :]                                   # tiled pos emb
        x_scr[...] = _layernorm(x0, emb[ROWS:ROWS + 1, :], emb[ROWS + 1:ROWS + 2, :])

    x = x_scr[...]                                                # (ROWS, H) f32
    bias = bias_ref[0]                                            # (ROWS, ROWS)
    vec = vec_ref[0, 0]                                           # (9, H) f32

    # ----- self-attention (QKV as one packed matmul; scale pre-folded) -----
    xb = x.astype(jnp.bfloat16)
    qkv = jnp.dot(xb, wqkv_ref[0, 0], preferred_element_type=jnp.float32)
    q = (qkv[:, 0:HIDDEN] + vec[0:1, :]).astype(jnp.bfloat16)
    k = (qkv[:, HIDDEN:2 * HIDDEN] + vec[1:2, :]).astype(jnp.bfloat16)
    v = (qkv[:, 2 * HIDDEN:3 * HIDDEN] + vec[2:3, :]).astype(jnp.bfloat16)

    ctx_heads = []
    for h in range(HEADS):                       # static per-head loop (tiny tiles)
        sl = slice(h * HEAD_DIM, (h + 1) * HEAD_DIM)
        s = lax.dot_general(q[:, sl], k[:, sl], (((1,), (1,)), ((), ())),
                            preferred_element_type=jnp.float32) + bias
        s = s - jnp.max(s, axis=-1, keepdims=True)
        p = jnp.exp(s)
        p = p * pl.reciprocal(jnp.sum(p, axis=-1, keepdims=True), approx=True)
        ctx_heads.append(jnp.dot(p.astype(jnp.bfloat16), v[:, sl],
                                 preferred_element_type=jnp.float32))
    ctx = jnp.concatenate(ctx_heads, axis=-1)                     # (ROWS, H)

    attn = jnp.dot(ctx.astype(jnp.bfloat16), wo_ref[0, 0],
                   preferred_element_type=jnp.float32) + vec[3:4, :]
    h1 = _layernorm(x + attn, vec[5:6, :], vec[6:7, :])

    # ----- feed-forward -----
    # TODO(synk): HF BERT uses exact (erf) GELU; tanh approximation kept here.
    ffn = jax.nn.gelu(
        jnp.dot(h1.astype(jnp.bfloat16), w1_ref[0, 0],
                preferred_element_type=jnp.float32) + b1_ref[0, 0],
        approximate=True)
    ffn_out = jnp.dot(ffn.astype(jnp.bfloat16), w2_ref[0, 0],
                      preferred_element_type=jnp.float32) + vec[4:5, :]
    x_new = _layernorm(h1 + ffn_out, vec[7:8, :], vec[8:9, :])
    x_scr[...] = x_new

    # ----- last layer: fused BERT pooler (tanh CLS dense) + latent projection -----
    @pl.when(l == LAYERS - 1)
    def _pool_project():
        cls = jnp.concatenate(
            [x_new[b * SEQ:b * SEQ + 1, :] for b in range(BATCH)], axis=0)  # (B, H)
        pooled = jnp.tanh(
            jnp.dot(cls.astype(jnp.bfloat16), wp_ref[0],
                    preferred_element_type=jnp.float32) + bp_ref[0])
        proj = jnp.dot(pooled.astype(jnp.bfloat16), wl_ref[0],
                       preferred_element_type=jnp.float32) + bl_ref[0]
        out_ref[0] = proj.astype(out_ref.dtype)


def _enc_spec(shape):
    # constant per encoder: block index depends only on grid axis 0
    z = (0,) * len(shape)
    return pl.BlockSpec((1,) + shape, lambda e, l, _z=z: (e,) + _z)


def _layer_spec(shape):
    # per (encoder, layer) weight slice
    z = (0,) * len(shape)
    return pl.BlockSpec((1, 1) + shape, lambda e, l, _z=z: (e, l) + _z)


def fused_dual_encoder(packed, ids, attn_bias):
    """ids: (2, ROWS, 1) int32; attn_bias: (2, ROWS, ROWS) f32."""
    return pl.pallas_call(
        fused_encoder_kernel,
        out_shape=jax.ShapeDtypeStruct((2, BATCH, LATENT), jnp.float32),
        grid=(2, LAYERS),
        in_specs=[
            _enc_spec((ROWS, 1)),               # ids
            _enc_spec((ROWS, ROWS)),            # additive attention mask
            _enc_spec((VOCAB, HIDDEN)),         # token embedding table (bf16)
            _enc_spec((ROWS + 2, HIDDEN)),      # [tiled pos emb; emb LN g; emb LN b]
            _layer_spec((HIDDEN, 3 * HIDDEN)),  # packed QKV weights (bf16)
            _layer_spec((HIDDEN, HIDDEN)),      # attention output weight (bf16)
            _layer_spec((HIDDEN, FFN)),         # FFN weight 1 (bf16)
            _layer_spec((FFN, HIDDEN)),         # FFN weight 2 (bf16)
            _layer_spec((9, HIDDEN)),           # bias / LayerNorm slab (f32)
            _layer_spec((1, FFN)),              # FFN bias 1 (f32)
            _enc_spec((HIDDEN, HIDDEN)),        # pooler weight (bf16)
            _enc_spec((1, HIDDEN)),             # pooler bias
            _enc_spec((HIDDEN, LATENT)),        # *2latent weight (bf16)
            _enc_spec((1, LATENT)),             # *2latent bias
        ],
        out_specs=pl.BlockSpec((1, BATCH, LATENT), lambda e, l: (e, 0, 0)),
        scratch_shapes=[pltpu.VMEM((ROWS, HIDDEN), jnp.float32)],
        compiler_params=pltpu.CompilerParams(
            dimension_semantics=("parallel", "arbitrary")),
    )(ids, attn_bias, packed['tok_emb'], packed['emb_slab'],
      packed['w_qkv'], packed['wo'], packed['w1'], packed['w2'],
      packed['vec'], packed['b1'],
      packed['wp'], packed['bp'], packed['wl'], packed['bl'])


# ------------------------------ parameter init -------------------------------
def _dense(key, fan_in, fan_out, scale=0.02):
    kw, kb = jax.random.split(key)
    w = scale * jax.random.normal(kw, (fan_in, fan_out), jnp.float32)
    b = scale * jax.random.normal(kb, (fan_out,), jnp.float32)
    return w, b


def make_encoder_params(key):
    keys = jax.random.split(key, 4 + LAYERS)
    params = {
        'tok_emb': 0.02 * jax.random.normal(keys[0], (VOCAB, HIDDEN), jnp.float32),
        'pos_emb': 0.02 * jax.random.normal(keys[1], (SEQ, HIDDEN), jnp.float32),
        'emb_ln_g': jnp.ones((HIDDEN,), jnp.float32),
        'emb_ln_b': jnp.zeros((HIDDEN,), jnp.float32),
    }
    layers = []
    for li in range(LAYERS):
        lk = jax.random.split(keys[2 + li], 6)
        wq, bq = _dense(lk[0], HIDDEN, HIDDEN)
        wk, bk = _dense(lk[1], HIDDEN, HIDDEN)
        wv, bv = _dense(lk[2], HIDDEN, HIDDEN)
        wo, bo = _dense(lk[3], HIDDEN, HIDDEN)
        w1, b1 = _dense(lk[4], HIDDEN, FFN)
        w2, b2 = _dense(lk[5], FFN, HIDDEN)
        layers.append(dict(
            wq=wq, bq=bq, wk=wk, bk=bk, wv=wv, bv=bv, wo=wo, bo=bo,
            ln1_g=jnp.ones((HIDDEN,), jnp.float32),
            ln1_b=jnp.zeros((HIDDEN,), jnp.float32),
            w1=w1, b1=b1, w2=w2, b2=b2,
            ln2_g=jnp.ones((HIDDEN,), jnp.float32),
            ln2_b=jnp.zeros((HIDDEN,), jnp.float32)))
    params['layers'] = layers
    wp, bp = _dense(keys[2 + LAYERS], HIDDEN, HIDDEN)      # BERT pooler dense
    params['pooler_w'], params['pooler_b'] = wp, bp
    wl, bl = _dense(keys[3 + LAYERS], HIDDEN, LATENT)      # *2latent_model (Linear)
    params['proj_w'], params['proj_b'] = wl, bl
    return params


def pack_encoder_params(p):
    """Pack per-layer weights into slabs; fold attention scale into Q; cast bf16."""
    scale = 1.0 / math.sqrt(HEAD_DIM)
    w_qkv, wo, w1, w2, vec, b1 = [], [], [], [], [], []
    for lp in p['layers']:
        w_qkv.append(jnp.concatenate([lp['wq'] * scale, lp['wk'], lp['wv']], axis=1))
        wo.append(lp['wo']); w1.append(lp['w1']); w2.append(lp['w2'])
        vec.append(jnp.stack([lp['bq'] * scale, lp['bk'], lp['bv'], lp['bo'],
                              lp['b2'], lp['ln1_g'], lp['ln1_b'],
                              lp['ln2_g'], lp['ln2_b']], axis=0))
        b1.append(lp['b1'][None, :])
    return dict(
        tok_emb=p['tok_emb'].astype(jnp.bfloat16),
        emb_slab=jnp.concatenate([jnp.tile(p['pos_emb'], (BATCH, 1)),
                                  p['emb_ln_g'][None, :],
                                  p['emb_ln_b'][None, :]], axis=0),
        w_qkv=jnp.stack(w_qkv).astype(jnp.bfloat16),   # (L, H, 3H)
        wo=jnp.stack(wo).astype(jnp.bfloat16),         # (L, H, H)
        w1=jnp.stack(w1).astype(jnp.bfloat16),         # (L, H, FFN)
        w2=jnp.stack(w2).astype(jnp.bfloat16),         # (L, FFN, H)
        vec=jnp.stack(vec),                            # (L, 9, H)  f32
        b1=jnp.stack(b1),                              # (L, 1, FFN) f32
        wp=p['pooler_w'].astype(jnp.bfloat16),
        bp=p['pooler_b'][None, :],
        wl=p['proj_w'].astype(jnp.bfloat16),
        bl=p['proj_b'][None, :])


def stack_encoders(pa, pb):
    """Stack protein/text packed params along a leading encoder axis of size 2."""
    return jax.tree_util.tree_map(lambda a, b: jnp.stack([a, b], axis=0), pa, pb)


# ------------------------------- forward pass --------------------------------
def build_attn_bias(mask):
    """(BATCH, SEQ) 0/1 mask -> (ROWS, ROWS) additive bias blocking padded keys
    and cross-batch attention for the flattened row layout."""
    rows = jnp.arange(ROWS) // SEQ
    same_batch = rows[:, None] == rows[None, :]
    key_valid = mask.reshape(ROWS).astype(bool)
    return jnp.where(same_batch & key_valid[None, :], 0.0, NEG_INF).astype(jnp.float32)


def protein_text_model_forward(packed_params,
                               protein_sequence_input_ids,
                               protein_sequence_attention_mask,
                               text_sequence_input_ids,
                               text_sequence_attention_mask):
    ids = jnp.stack([protein_sequence_input_ids, text_sequence_input_ids],
                    axis=0).astype(jnp.int32).reshape(2, ROWS, 1)
    bias = jnp.stack([build_attn_bias(protein_sequence_attention_mask),
                      build_attn_bias(text_sequence_attention_mask)], axis=0)
    reprs = fused_dual_encoder(packed_params, ids, bias)   # (2, BATCH, LATENT)
    return reprs[0], reprs[1]
    # TODO(synk): the PyTorch `except: fit_transform(...)` fallback (sklearn-style
    # projection) has no Pallas equivalent; only the nn.Linear latent heads are
    # implemented.


# ----------------------------------- main ------------------------------------
if __name__ == "__main__":
    root = jax.random.PRNGKey(0)
    k_prot, k_text, k_pid, k_tid = jax.random.split(root, 4)

    protein_params = make_encoder_params(k_prot)
    text_params = make_encoder_params(k_text)
    packed = stack_encoders(pack_encoder_params(protein_params),
                            pack_encoder_params(text_params))

    protein_ids = jax.random.randint(k_pid, (BATCH, SEQ), 0, VOCAB, dtype=jnp.int32)
    text_ids = jax.random.randint(k_tid, (BATCH, SEQ), 0, VOCAB, dtype=jnp.int32)
    protein_mask = jnp.array([[1] * SEQ, [1] * (SEQ - 2) + [0] * 2], dtype=jnp.int32)
    text_mask = jnp.array([[1] * (SEQ - 1) + [0], [1] * SEQ], dtype=jnp.int32)

    fwd = jax.jit(protein_text_model_forward)
    protein_repr, description_repr = fwd(packed, protein_ids, protein_mask,
                                         text_ids, text_mask)
    jax.block_until_ready((protein_repr, description_repr))

    assert protein_repr.shape == (BATCH, LATENT), protein_repr.shape
    assert description_repr.shape == (BATCH, LATENT), description_repr.shape
    assert jnp.all(jnp.isfinite(protein_repr)) and jnp.all(jnp.isfinite(description_repr))
    print("KERNEL_OK")
</pallas_src>

<mosaic_0001>
module attributes {stable_mosaic.version = 11 : i64} {
  func.func @fused_encoder_kernel(%arg0: i32, %arg1: i32, %arg2: memref<1x16x1xi32, #tpu.memory_space<vmem>>, %arg3: memref<1x16x16xf32, #tpu.memory_space<vmem>>, %arg4: memref<1x64x32xbf16, #tpu.memory_space<vmem>>, %arg5: memref<1x18x32xf32, #tpu.memory_space<vmem>>, %arg6: memref<1x1x32x96xbf16, #tpu.memory_space<vmem>>, %arg7: memref<1x1x32x32xbf16, #tpu.memory_space<vmem>>, %arg8: memref<1x1x32x64xbf16, #tpu.memory_space<vmem>>, %arg9: memref<1x1x64x32xbf16, #tpu.memory_space<vmem>>, %arg10: memref<1x1x9x32xf32, #tpu.memory_space<vmem>>, %arg11: memref<1x1x1x64xf32, #tpu.memory_space<vmem>>, %arg12: memref<1x32x32xbf16, #tpu.memory_space<vmem>>, %arg13: memref<1x1x32xf32, #tpu.memory_space<vmem>>, %arg14: memref<1x32x16xbf16, #tpu.memory_space<vmem>>, %arg15: memref<1x1x16xf32, #tpu.memory_space<vmem>>, %arg16: memref<1x2x16xf32, #tpu.memory_space<vmem>>, %arg17: memref<16x32xf32, #tpu.memory_space<vmem>>) attributes {dimension_semantics = [#tpu.dimension_semantics<parallel>, #tpu.dimension_semantics<arbitrary>], iteration_bounds = array<i64: 2, 2>, scalar_prefetch = 0 : i64, scratch_operands = 1 : i64, tpu.core_type = #tpu.core_type<tc>, window_params = [{transform_indices = @transform_0, window_bounds = array<i64: 1, 16, 1>}, {transform_indices = @transform_1, window_bounds = array<i64: 1, 16, 16>}, {transform_indices = @transform_2, window_bounds = array<i64: 1, 64, 32>}, {transform_indices = @transform_3, window_bounds = array<i64: 1, 18, 32>}, {transform_indices = @transform_4, window_bounds = array<i64: 1, 1, 32, 96>}, {transform_indices = @transform_5, window_bounds = array<i64: 1, 1, 32, 32>}, {transform_indices = @transform_6, window_bounds = array<i64: 1, 1, 32, 64>}, {transform_indices = @transform_7, window_bounds = array<i64: 1, 1, 64, 32>}, {transform_indices = @transform_8, window_bounds = array<i64: 1, 1, 9, 32>}, {transform_indices = @transform_9, window_bounds = array<i64: 1, 1, 1, 64>}, {transform_indices = @transform_10, window_bounds = array<i64: 1, 32, 32>}, {transform_indices = @transform_11, window_bounds = array<i64: 1, 1, 32>}, {transform_indices = @transform_12, window_bounds = array<i64: 1, 32, 16>}, {transform_indices = @transform_13, window_bounds = array<i64: 1, 1, 16>}, {transform_indices = @transform_14, window_bounds = array<i64: 1, 2, 16>}]} {
    %c0_i32 = arith.constant 0 : i32
    %0 = arith.cmpi eq, %arg1, %c0_i32 : i32
    %1 = arith.extui %0 : i1 to i32
    %c0_i32_0 = arith.constant 0 : i32
    %2 = arith.cmpi ne, %1, %c0_i32_0 : i32
    scf.if %2 {
      %c0_65 = arith.constant 0 : index
      %c0_66 = arith.constant 0 : index
      %c0_67 = arith.constant 0 : index
      %185 = vector.load %arg2[%c0_65, %c0_66, %c0_67] : memref<1x16x1xi32, #tpu.memory_space<vmem>>, vector<1x16x1xi32>
      %186 = vector.shape_cast %185 : vector<1x16x1xi32> to vector<16x1xi32>
      %187 = tpu.iota {dimensions = array<i32: 1>} : vector<16x64xi32>
      %188 = vector.broadcast %186 : vector<16x1xi32> to vector<16x64xi32>
      %189 = arith.cmpi eq, %188, %187 : vector<16x64xi32>
      %cst_68 = arith.constant 1.000000e+00 : f32
      %cst_69 = arith.constant 0.000000e+00 : f32
      %190 = vector.broadcast %cst_68 : f32 to vector<16x64xf32>
      %191 = vector.broadcast %cst_69 : f32 to vector<16x64xf32>
      %192 = arith.select %189, %190, %191 : vector<16x64xi1>, vector<16x64xf32>
      %193 = arith.truncf %192 : vector<16x64xf32> to vector<16x64xbf16>
      %c0_70 = arith.constant 0 : index
      %c0_71 = arith.constant 0 : index
      %c0_72 = arith.constant 0 : index
      %194 = vector.load %arg4[%c0_70, %c0_71, %c0_72] : memref<1x64x32xbf16, #tpu.memory_space<vmem>>, vector<1x64x32xbf16>
      %195 = vector.shape_cast %194 : vector<1x64x32xbf16> to vector<64x32xbf16>
      %cst_73 = arith.constant dense<0.000000e+00> : vector<16x32xf32>
      %196 = tpu.matmul %193, %195, %cst_73 {dimension_numbers = #tpu.dot_dimension_numbers<[1], [0], [0], [1], [0, 0, 1, 1], [], []>} : vector<16x64xbf16>, vector<64x32xbf16>, vector<16x32xf32> -> vector<16x32xf32>
      %c0_74 = arith.constant 0 : index
      %c0_75 = arith.constant 0 : index
      %c0_76 = arith.constant 0 : index
      %197 = vector.load %arg5[%c0_74, %c0_75, %c0_76] : memref<1x18x32xf32, #tpu.memory_space<vmem>>, vector<1x18x32xf32>
      %198 = vector.shape_cast %197 : vector<1x18x32xf32> to vector<18x32xf32>
      %199 = vector.extract_strided_slice %198 {offsets = [0, 0], sizes = [16, 32], strides = [1, 1]} : vector<18x32xf32> to vector<16x32xf32>
      %200 = arith.addf %196, %199 : vector<16x32xf32>
      %201 = vector.extract_strided_slice %198 {offsets = [16, 0], sizes = [1, 32], strides = [1, 1]} : vector<18x32xf32> to vector<1x32xf32>
      %202 = vector.extract_strided_slice %198 {offsets = [17, 0], sizes = [1, 32], strides = [1, 1]} : vector<18x32xf32> to vector<1x32xf32>
      %cst_77 = arith.constant dense<0.000000e+00> : vector<16xf32>
      %203 = vector.multi_reduction <add>, %200, %cst_77 [1] : vector<16x32xf32> to vector<16xf32>
      %204 = vector.shape_cast %203 : vector<16xf32> to vector<16x1xf32>
      %cst_78 = arith.constant 3.200000e+01 : f32
      %205 = vector.broadcast %cst_78 : f32 to vector<16x1xf32>
      %206 = arith.divf %204, %205 : vector<16x1xf32>
      %207 = vector.broadcast %206 : vector<16x1xf32> to vector<16x32xf32>
      %208 = arith.subf %200, %207 : vector<16x32xf32>
      %209 = arith.mulf %208, %208 : vector<16x32xf32>
      %cst_79 = arith.constant dense<0.000000e+00> : vector<16xf32>
      %210 = vector.multi_reduction <add>, %209, %cst_79 [1] : vector<16x32xf32> to vector<16xf32>
      %211 = vector.shape_cast %210 : vector<16xf32> to vector<16x1xf32>
      %cst_80 = arith.constant 3.200000e+01 : f32
      %212 = vector.broadcast %cst_80 : f32 to vector<16x1xf32>
      %213 = arith.divf %211, %212 : vector<16x1xf32>
      %214 = vector.broadcast %206 : vector<16x1xf32> to vector<16x32xf32>
      %215 = arith.subf %200, %214 : vector<16x32xf32>
      %cst_81 = arith.constant 9.99999996E-13 : f32
      %216 = vector.broadcast %cst_81 : f32 to vector<16x1xf32>
      %217 = arith.addf %213, %216 : vector<16x1xf32>
      %218 = math.rsqrt %217 : vector<16x1xf32>
      %219 = vector.broadcast %218 : vector<16x1xf32> to vector<16x32xf32>
      %220 = arith.mulf %215, %219 : vector<16x32xf32>
      %221 = vector.broadcast %201 : vector<1x32xf32> to vector<16x32xf32>
      %222 = arith.mulf %220, %221 : vector<16x32xf32>
      %223 = vector.broadcast %202 : vector<1x32xf32> to vector<16x32xf32>
      %224 = arith.addf %222, %223 : vector<16x32xf32>
      %c0_82 = arith.constant 0 : index
      %c0_83 = arith.constant 0 : index
      %225 = vector.load %arg17[%c0_82, %c0_83] : memref<16x32xf32, #tpu.memory_space<vmem>>, vector<16x32xf32>
      tpu.vector_store %arg17[%c0_82, %c0_83], %224 {strides = array<i32>} : memref<16x32xf32, #tpu.memory_space<vmem>>, vector<16x32xf32>,
    } else {
    }
    %c0 = arith.constant 0 : index
    %c0_1 = arith.constant 0 : index
    %3 = vector.load %arg17[%c0, %c0_1] : memref<16x32xf32, #tpu.memory_space<vmem>>, vector<16x32xf32>
    %c0_2 = arith.constant 0 : index
    %c0_3 = arith.constant 0 : index
    %c0_4 = arith.constant 0 : index
    %4 = vector.load %arg3[%c0_2, %c0_3, %c0_4] : memref<1x16x16xf32, #tpu.memory_space<vmem>>, vector<1x16x16xf32>
    %5 = vector.shape_cast %4 : vector<1x16x16xf32> to vector<16x16xf32>
    %c0_5 = arith.constant 0 : index
    %c0_6 = arith.constant 0 : index
    %c0_7 = arith.constant 0 : index
    %c0_8 = arith.constant 0 : index
    %6 = vector.load %arg10[%c0_5, %c0_6, %c0_7, %c0_8] : memref<1x1x9x32xf32, #tpu.memory_space<vmem>>, vector<1x1x9x32xf32>
    %7 = vector.shape_cast %6 : vector<1x1x9x32xf32> to vector<9x32xf32>
    %8 = arith.truncf %3 : vector<16x32xf32> to vector<16x32xbf16>
    %c0_9 = arith.constant 0 : index
    %c0_10 = arith.constant 0 : index
    %c0_11 = arith.constant 0 : index
    %c0_12 = arith.constant 0 : index
    %9 = vector.load %arg6[%c0_9, %c0_10, %c0_11, %c0_12] : memref<1x1x32x96xbf16, #tpu.memory_space<vmem>>, vector<1x1x32x96xbf16>
    %10 = vector.shape_cast %9 : vector<1x1x32x96xbf16> to vector<32x96xbf16>
    %cst = arith.constant dense<0.000000e+00> : vector<16x96xf32>
    %11 = tpu.matmul %8, %10, %cst {dimension_numbers = #tpu.dot_dimension_numbers<[1], [0], [0], [1], [0, 0, 1, 1], [], []>} : vector<16x32xbf16>, vector<32x96xbf16>, vector<16x96xf32> -> vector<16x96xf32>
    %12 = vector.extract_strided_slice %11 {offsets = [0, 0], sizes = [16, 32], strides = [1, 1]} : vector<16x96xf32> to vector<16x32xf32>
    %13 = vector.extract_strided_slice %7 {offsets = [0, 0], sizes = [1, 32], strides = [1, 1]} : vector<9x32xf32> to vector<1x32xf32>
    %14 = vector.broadcast %13 : vector<1x32xf32> to vector<16x32xf32>
    %15 = arith.addf %12, %14 : vector<16x32xf32>
    %16 = arith.truncf %15 : vector<16x32xf32> to vector<16x32xbf16>
    %17 = vector.extract_strided_slice %11 {offsets = [0, 32], sizes = [16, 32], strides = [1, 1]} : vector<16x96xf32> to vector<16x32xf32>
    %18 = vector.extract_strided_slice %7 {offsets = [1, 0], sizes = [1, 32], strides = [1, 1]} : vector<9x32xf32> to vector<1x32xf32>
    %19 = vector.broadcast %18 : vector<1x32xf32> to vector<16x32xf32>
    %20 = arith.addf %17, %19 : vector<16x32xf32>
    %21 = arith.truncf %20 : vector<16x32xf32> to vector<16x32xbf16>
    %22 = vector.extract_strided_slice %11 {offsets = [0, 64], sizes = [16, 32], strides = [1, 1]} : vector<16x96xf32> to vector<16x32xf32>
    %23 = vector.extract_strided_slice %7 {offsets = [2, 0], sizes = [1, 32], strides = [1, 1]} : vector<9x32xf32> to vector<1x32xf32>
    %24 = vector.broadcast %23 : vector<1x32xf32> to vector<16x32xf32>
    %25 = arith.addf %22, %24 : vector<16x32xf32>
    %26 = arith.truncf %25 : vector<16x32xf32> to vector<16x32xbf16>
    %27 = vector.extract_strided_slice %16 {offsets = [0, 0], sizes = [16, 8], strides = [1, 1]} : vector<16x32xbf16> to vector<16x8xbf16>
    %28 = vector.extract_strided_slice %21 {offsets = [0, 0], sizes = [16, 8], strides = [1, 1]} : vector<16x32xbf16> to vector<16x8xbf16>
    %cst_13 = arith.constant dense<0.000000e+00> : vector<16x16xf32>
    %29 = tpu.matmul %27, %28, %cst_13 {dimension_numbers = #tpu.dot_dimension_numbers<[1], [1], [0], [0], [0, 0, 1, 0], [], []>} : vector<16x8xbf16>, vector<16x8xbf16>, vector<16x16xf32> -> vector<16x16xf32>
    %30 = arith.addf %29, %5 : vector<16x16xf32>
    %cst_14 = arith.constant dense<0xFF800000> : vector<16xf32>
    %31 = vector.multi_reduction <maximumf>, %30, %cst_14 [1] : vector<16x16xf32> to vector<16xf32>
    %32 = vector.shape_cast %31 : vector<16xf32> to vector<16x1xf32>
    %33 = vector.broadcast %32 : vector<16x1xf32> to vector<16x16xf32>
    %34 = arith.subf %30, %33 : vector<16x16xf32>
    %35 = math.exp %34 : vector<16x16xf32>
    %cst_15 = arith.constant dense<0.000000e+00> : vector<16xf32>
    %36 = vector.multi_reduction <add>, %35, %cst_15 [1] : vector<16x16xf32> to vector<16xf32>
    %37 = vector.shape_cast %36 : vector<16xf32> to vector<16x1xf32>
    %38 = tpu.reciprocal %37 {approx = true} : vector<16x1xf32> -> vector<16x1xf32>
    %39 = vector.broadcast %38 : vector<16x1xf32> to vector<16x16xf32>
    %40 = arith.mulf %35, %39 : vector<16x16xf32>
    %41 = arith.truncf %40 : vector<16x16xf32> to vector<16x16xbf16>
    %42 = vector.extract_strided_slice %26 {offsets = [0, 0], sizes = [16, 8], strides = [1, 1]} : vector<16x32xbf16> to vector<16x8xbf16>
    %cst_16 = arith.constant dense<0.000000e+00> : vector<16x8xf32>
    %43 = tpu.matmul %41, %42, %cst_16 {dimension_numbers = #tpu.dot_dimension_numbers<[1], [0], [0], [1], [0, 0, 1, 1], [], []>} : vector<16x16xbf16>, vector<16x8xbf16>, vector<16x8xf32> -> vector<16x8xf32>
    %44 = vector.extract_strided_slice %16 {offsets = [0, 8], sizes = [16, 8], strides = [1, 1]} : vector<16x32xbf16> to vector<16x8xbf16>
    %45 = vector.extract_strided_slice %21 {offsets = [0, 8], sizes = [16, 8], strides = [1, 1]} : vector<16x32xbf16> to vector<16x8xbf16>
    %cst_17 = arith.constant dense<0.000000e+00> : vector<16x16xf32>
    %46 = tpu.matmul %44, %45, %cst_17 {dimension_numbers = #tpu.dot_dimension_numbers<[1], [1], [0], [0], [0, 0, 1, 0], [], []>} : vector<16x8xbf16>, vector<16x8xbf16>, vector<16x16xf32> -> vector<16x16xf32>
    %47 = arith.addf %46, %5 : vector<16x16xf32>
    %cst_18 = arith.constant dense<0xFF800000> : vector<16xf32>
    %48 = vector.multi_reduction <maximumf>, %47, %cst_18 [1] : vector<16x16xf32> to vector<16xf32>
    %49 = vector.shape_cast %48 : vector<16xf32> to vector<16x1xf32>
    %50 = vector.broadcast %49 : vector<16x1xf32> to vector<16x16xf32>
    %51 = arith.subf %47, %50 : vector<16x16xf32>
    %52 = math.exp %51 : vector<16x16xf32>
    %cst_19 = arith.constant dense<0.000000e+00> : vector<16xf32>
    %53 = vector.multi_reduction <add>, %52, %cst_19 [1] : vector<16x16xf32> to vector<16xf32>
    %54 = vector.shape_cast %53 : vector<16xf32> to vector<16x1xf32>
    %55 = tpu.reciprocal %54 {approx = true} : vector<16x1xf32> -> vector<16x1xf32>
    %56 = vector.broadcast %55 : vector<16x1xf32> to vector<16x16xf32>
    %57 = arith.mulf %52, %56 : vector<16x16xf32>
    %58 = arith.truncf %57 : vector<16x16xf32> to vector<16x16xbf16>
    %59 = vector.extract_strided_slice %26 {offsets = [0, 8], sizes = [16, 8], strides = [1, 1]} : vector<16x32xbf16> to vector<16x8xbf16>
    %cst_20 = arith.constant dense<0.000000e+00> : vector<16x8xf32>
    %60 = tpu.matmul %58, %59, %cst_20 {dimension_numbers = #tpu.dot_dimension_numbers<[1], [0], [0], [1], [0, 0, 1, 1], [], []>} : vector<16x16xbf16>, vector<16x8xbf16>, vector<16x8xf32> -> vector<16x8xf32>
    %61 = vector.extract_strided_slice %16 {offsets = [0, 16], sizes = [16, 8], strides = [1, 1]} : vector<16x32xbf16> to vector<16x8xbf16>
    %62 = vector.extract_strided_slice %21 {offsets = [0, 16], sizes = [16, 8], strides = [1, 1]} : vector<16x32xbf16> to vector<16x8xbf16>
    %cst_21 = arith.constant dense<0.000000e+00> : vector<16x16xf32>
    %63 = tpu.matmul %61, %62, %cst_21 {dimension_numbers = #tpu.dot_dimension_numbers<[1], [1], [0], [0], [0, 0, 1, 0], [], []>} : vector<16x8xbf16>, vector<16x8xbf16>, vector<16x16xf32> -> vector<16x16xf32>
    %64 = arith.addf %63, %5 : vector<16x16xf32>
    %cst_22 = arith.constant dense<0xFF800000> : vector<16xf32>
    %65 = vector.multi_reduction <maximumf>, %64, %cst_22 [1] : vector<16x16xf32> to vector<16xf32>
    %66 = vector.shape_cast %65 : vector<16xf32> to vector<16x1xf32>
    %67 = vector.broadcast %66 : vector<16x1xf32> to vector<16x16xf32>
    %68 = arith.subf %64, %67 : vector<16x16xf32>
    %69 = math.exp %68 : vector<16x16xf32>
    %cst_23 = arith.constant dense<0.000000e+00> : vector<16xf32>
    %70 = vector.multi_reduction <add>, %69, %cst_23 [1] : vector<16x16xf32> to vector<16xf32>
    %71 = vector.shape_cast %70 : vector<16xf32> to vector<16x1xf32>
    %72 = tpu.reciprocal %71 {approx = true} : vector<16x1xf32> -> vector<16x1xf32>
    %73 = vector.broadcast %72 : vector<16x1xf32> to vector<16x16xf32>
    %74 = arith.mulf %69, %73 : vector<16x16xf32>
    %75 = arith.truncf %74 : vector<16x16xf32> to vector<16x16xbf16>
    %76 = vector.extract_strided_slice %26 {offsets = [0, 16], sizes = [16, 8], strides = [1, 1]} : vector<16x32xbf16> to vector<16x8xbf16>
    %cst_24 = arith.constant dense<0.000000e+00> : vector<16x8xf32>
    %77 = tpu.matmul %75, %76, %cst_24 {dimension_numbers = #tpu.dot_dimension_numbers<[1], [0], [0], [1], [0, 0, 1, 1], [], []>} : vector<16x16xbf16>, vector<16x8xbf16>, vector<16x8xf32> -> vector<16x8xf32>
    %78 = vector.extract_strided_slice %16 {offsets = [0, 24], sizes = [16, 8], strides = [1, 1]} : vector<16x32xbf16> to vector<16x8xbf16>
    %79 = vector.extract_strided_slice %21 {offsets = [0, 24], sizes = [16, 8], strides = [1, 1]} : vector<16x32xbf16> to vector<16x8xbf16>
    %cst_25 = arith.constant dense<0.000000e+00> : vector<16x16xf32>
    %80 = tpu.matmul %78, %79, %cst_25 {dimension_numbers = #tpu.dot_dimension_numbers<[1], [1], [0], [0], [0, 0, 1, 0], [], []>} : vector<16x8xbf16>, vector<16x8xbf16>, vector<16x16xf32> -> vector<16x16xf32>
    %81 = arith.addf %80, %5 : vector<16x16xf32>
    %cst_26 = arith.constant dense<0xFF800000> : vector<16xf32>
    %82 = vector.multi_reduction <maximumf>, %81, %cst_26 [1] : vector<16x16xf32> to vector<16xf32>
    %83 = vector.shape_cast %82 : vector<16xf32> to vector<16x1xf32>
    %84 = vector.broadcast %83 : vector<16x1xf32> to vector<16x16xf32>
    %85 = arith.subf %81, %84 : vector<16x16xf32>
    %86 = math.exp %85 : vector<16x16xf32>
    %cst_27 = arith.constant dense<0.000000e+00> : vector<16xf32>
    %87 = vector.multi_reduction <add>, %86, %cst_27 [1] : vector<16x16xf32> to vector<16xf32>
    %88 = vector.shape_cast %87 : vector<16xf32> to vector<16x1xf32>
    %89 = tpu.reciprocal %88 {approx = true} : vector<16x1xf32> -> vector<16x1xf32>
    %90 = vector.broadcast %89 : vector<16x1xf32> to vector<16x16xf32>
    %91 = arith.mulf %86, %90 : vector<16x16xf32>
    %92 = arith.truncf %91 : vector<16x16xf32> to vector<16x16xbf16>
    %93 = vector.extract_strided_slice %26 {offsets = [0, 24], sizes = [16, 8], strides = [1, 1]} : vector<16x32xbf16> to vector<16x8xbf16>
    %cst_28 = arith.constant dense<0.000000e+00> : vector<16x8xf32>
    %94 = tpu.matmul %92, %93, %cst_28 {dimension_numbers = #tpu.dot_dimension_numbers<[1], [0], [0], [1], [0, 0, 1, 1], [], []>} : vector<16x16xbf16>, vector<16x8xbf16>, vector<16x8xf32> -> vector<16x8xf32>
    %95 = tpu.concatenate %43, %60, %77, %94 in 1 : vector<16x8xf32>, vector<16x8xf32>, vector<16x8xf32>, vector<16x8xf32> -> vector<16x32xf32>
    %96 = arith.truncf %95 : vector<16x32xf32> to vector<16x32xbf16>
    %c0_29 = arith.constant 0 : index
    %c0_30 = arith.constant 0 : index
    %c0_31 = arith.constant 0 : index
    %c0_32 = arith.constant 0 : index
    %97 = vector.load %arg7[%c0_29, %c0_30, %c0_31, %c0_32] : memref<1x1x32x32xbf16, #tpu.memory_space<vmem>>, vector<1x1x32x32xbf16>
    %98 = vector.shape_cast %97 : vector<1x1x32x32xbf16> to vector<32x32xbf16>
    %cst_33 = arith.constant dense<0.000000e+00> : vector<16x32xf32>
    %99 = tpu.matmul %96, %98, %cst_33 {dimension_numbers = #tpu.dot_dimension_numbers<[1], [0], [0], [1], [0, 0, 1, 1], [], []>} : vector<16x32xbf16>, vector<32x32xbf16>, vector<16x32xf32> -> vector<16x32xf32>
    %100 = vector.extract_strided_slice %7 {offsets = [3, 0], sizes = [1, 32], strides = [1, 1]} : vector<9x32xf32> to vector<1x32xf32>
    %101 = vector.broadcast %100 : vector<1x32xf32> to vector<16x32xf32>
    %102 = arith.addf %99, %101 : vector<16x32xf32>
    %103 = arith.addf %3, %102 : vector<16x32xf32>
    %104 = vector.extract_strided_slice %7 {offsets = [5, 0], sizes = [1, 32], strides = [1, 1]} : vector<9x32xf32> to vector<1x32xf32>
    %105 = vector.extract_strided_slice %7 {offsets = [6, 0], sizes = [1, 32], strides = [1, 1]} : vector<9x32xf32> to vector<1x32xf32>
    %cst_34 = arith.constant dense<0.000000e+00> : vector<16xf32>
    %106 = vector.multi_reduction <add>, %103, %cst_34 [1] : vector<16x32xf32> to vector<16xf32>
    %107 = vector.shape_cast %106 : vector<16xf32> to vector<16x1xf32>
    %cst_35 = arith.constant 3.200000e+01 : f32
    %108 = vector.broadcast %cst_35 : f32 to vector<16x1xf32>
    %109 = arith.divf %107, %108 : vector<16x1xf32>
    %110 = vector.broadcast %109 : vector<16x1xf32> to vector<16x32xf32>
    %111 = arith.subf %103, %110 : vector<16x32xf32>
    %112 = arith.mulf %111, %111 : vector<16x32xf32>
    %cst_36 = arith.constant dense<0.000000e+00> : vector<16xf32>
    %113 = vector.multi_reduction <add>, %112, %cst_36 [1] : vector<16x32xf32> to vector<16xf32>
    %114 = vector.shape_cast %113 : vector<16xf32> to vector<16x1xf32>
    %cst_37 = arith.constant 3.200000e+01 : f32
    %115 = vector.broadcast %cst_37 : f32 to vector<16x1xf32>
    %116 = arith.divf %114, %115 : vector<16x1xf32>
    %117 = vector.broadcast %109 : vector<16x1xf32> to vector<16x32xf32>
    %118 = arith.subf %103, %117 : vector<16x32xf32>
    %cst_38 = arith.constant 9.99999996E-13 : f32
    %119 = vector.broadcast %cst_38 : f32 to vector<16x1xf32>
    %120 = arith.addf %116, %119 : vector<16x1xf32>
    %121 = math.rsqrt %120 : vector<16x1xf32>
    %122 = vector.broadcast %121 : vector<16x1xf32> to vector<16x32xf32>
    %123 = arith.mulf %118, %122 : vector<16x32xf32>
    %124 = vector.broadcast %104 : vector<1x32xf32> to vector<16x32xf32>
    %125 = arith.mulf %123, %124 : vector<16x32xf32>
    %126 = vector.broadcast %105 : vector<1x32xf32> to vector<16x32xf32>
    %127 = arith.addf %125, %126 : vector<16x32xf32>
    %128 = arith.truncf %127 : vector<16x32xf32> to vector<16x32xbf16>
    %c0_39 = arith.constant 0 : index
    %c0_40 = arith.constant 0 : index
    %c0_41 = arith.constant 0 : index
    %c0_42 = arith.constant 0 : index
    %129 = vector.load %arg8[%c0_39, %c0_40, %c0_41, %c0_42] : memref<1x1x32x64xbf16, #tpu.memory_space<vmem>>, vector<1x1x32x64xbf16>
    %130 = vector.shape_cast %129 : vector<1x1x32x64xbf16> to vector<32x64xbf16>
    %cst_43 = arith.constant dense<0.000000e+00> : vector<16x64xf32>
    %131 = tpu.matmul %128, %130, %cst_43 {dimension_numbers = #tpu.dot_dimension_numbers<[1], [0], [0], [1], [0, 0, 1, 1], [], []>} : vector<16x32xbf16>, vector<32x64xbf16>, vector<16x64xf32> -> vector<16x64xf32>
    %c0_44 = arith.constant 0 : index
    %c0_45 = arith.constant 0 : index
    %c0_46 = arith.constant 0 : index
    %c0_47 = arith.constant 0 : index
    %132 = vector.load %arg11[%c0_44, %c0_45, %c0_46, %c0_47] : memref<1x1x1x64xf32, #tpu.memory_space<vmem>>, vector<1x1x1x64xf32>
    %133 = vector.shape_cast %132 : vector<1x1x1x64xf32> to vector<1x64xf32>
    %134 = vector.broadcast %133 : vector<1x64xf32> to vector<16x64xf32>
    %135 = arith.addf %131, %134 : vector<16x64xf32>
    %136 = arith.mulf %135, %135 : vector<16x64xf32>
    %137 = arith.mulf %135, %136 : vector<16x64xf32>
    %cst_48 = arith.constant 4.471500e-02 : f32
    %138 = vector.broadcast %cst_48 : f32 to vector<16x64xf32>
    %139 = arith.mulf %138, %137 : vector<16x64xf32>
    %140 = arith.addf %135, %139 : vector<16x64xf32>
    %cst_49 = arith.constant 0.797884583 : f32
    %141 = vector.broadcast %cst_49 : f32 to vector<16x64xf32>
    %142 = arith.mulf %141, %140 : vector<16x64xf32>
    %143 = math.tanh %142 : vector<16x64xf32>
    %cst_50 = arith.constant 1.000000e+00 : f32
    %144 = vector.broadcast %cst_50 : f32 to vector<16x64xf32>
    %145 = arith.addf %144, %143 : vector<16x64xf32>
    %cst_51 = arith.constant 5.000000e-01 : f32
    %146 = vector.broadcast %cst_51 : f32 to vector<16x64xf32>
    %147 = arith.mulf %146, %145 : vector<16x64xf32>
    %148 = arith.mulf %135, %147 : vector<16x64xf32>
    %149 = arith.truncf %148 : vector<16x64xf32> to vector<16x64xbf16>
    %c0_52 = arith.constant 0 : index
    %c0_53 = arith.constant 0 : index
    %c0_54 = arith.constant 0 : index
    %c0_55 = arith.constant 0 : index
    %150 = vector.load %arg9[%c0_52, %c0_53, %c0_54, %c0_55] : memref<1x1x64x32xbf16, #tpu.memory_space<vmem>>, vector<1x1x64x32xbf16>
    %151 = vector.shape_cast %150 : vector<1x1x64x32xbf16> to vector<64x32xbf16>
    %cst_56 = arith.constant dense<0.000000e+00> : vector<16x32xf32>
    %152 = tpu.matmul %149, %151, %cst_56 {dimension_numbers = #tpu.dot_dimension_numbers<[1], [0], [0], [1], [0, 0, 1, 1], [], []>} : vector<16x64xbf16>, vector<64x32xbf16>, vector<16x32xf32> -> vector<16x32xf32>
    %153 = vector.extract_strided_slice %7 {offsets = [4, 0], sizes = [1, 32], strides = [1, 1]} : vector<9x32xf32> to vector<1x32xf32>
    %154 = vector.broadcast %153 : vector<1x32xf32> to vector<16x32xf32>
    %155 = arith.addf %152, %154 : vector<16x32xf32>
    %156 = arith.addf %127, %155 : vector<16x32xf32>
    %157 = vector.extract_strided_slice %7 {offsets = [7, 0], sizes = [1, 32], strides = [1, 1]} : vector<9x32xf32> to vector<1x32xf32>
    %158 = vector.extract_strided_slice %7 {offsets = [8, 0], sizes = [1, 32], strides = [1, 1]} : vector<9x32xf32> to vector<1x32xf32>
    %cst_57 = arith.constant dense<0.000000e+00> : vector<16xf32>
    %159 = vector.multi_reduction <add>, %156, %cst_57 [1] : vector<16x32xf32> to vector<16xf32>
    %160 = vector.shape_cast %159 : vector<16xf32> to vector<16x1xf32>
    %cst_58 = arith.constant 3.200000e+01 : f32
    %161 = vector.broadcast %cst_58 : f32 to vector<16x1xf32>
    %162 = arith.divf %160, %161 : vector<16x1xf32>
    %163 = vector.broadcast %162 : vector<16x1xf32> to vector<16x32xf32>
    %164 = arith.subf %156, %163 : vector<16x32xf32>
    %165 = arith.mulf %164, %164 : vector<16x32xf32>
    %cst_59 = arith.constant dense<0.000000e+00> : vector<16xf32>
    %166 = vector.multi_reduction <add>, %165, %cst_59 [1] : vector<16x32xf32> to vector<16xf32>
    %167 = vector.shape_cast %166 : vector<16xf32> to vector<16x1xf32>
    %cst_60 = arith.constant 3.200000e+01 : f32
    %168 = vector.broadcast %cst_60 : f32 to vector<16x1xf32>
    %169 = arith.divf %167, %168 : vector<16x1xf32>
    %170 = vector.broadcast %162 : vector<16x1xf32> to vector<16x32xf32>
    %171 = arith.subf %156, %170 : vector<16x32xf32>
    %cst_61 = arith.constant 9.99999996E-13 : f32
    %172 = vector.broadcast %cst_61 : f32 to vector<16x1xf32>
    %173 = arith.addf %169, %172 : vector<16x1xf32>
    %174 = math.rsqrt %173 : vector<16x1xf32>
    %175 = vector.broadcast %174 : vector<16x1xf32> to vector<16x32xf32>
    %176 = arith.mulf %171, %175 : vector<16x32xf32>
    %177 = vector.broadcast %157 : vector<1x32xf32> to vector<16x32xf32>
    %178 = arith.mulf %176, %177 : vector<16x32xf32>
    %179 = vector.broadcast %158 : vector<1x32xf32> to vector<16x32xf32>
    %180 = arith.addf %178, %179 : vector<16x32xf32>
    %c0_62 = arith.constant 0 : index
    %c0_63 = arith.constant 0 : index
    %181 = vector.load %arg17[%c0_62, %c0_63] : memref<16x32xf32, #tpu.memory_space<vmem>>, vector<16x32xf32>
    tpu.vector_store %arg17[%c0_62, %c0_63], %180 {strides = array<i32>} : memref<16x32xf32, #tpu.memory_space<vmem>>, vector<16x32xf32>,
    %c1_i32 = arith.constant 1 : i32
    %182 = arith.cmpi eq, %arg1, %c1_i32 : i32
    %183 = arith.extui %182 : i1 to i32
    %c0_i32_64 = arith.constant 0 : i32
    %184 = arith.cmpi ne, %183, %c0_i32_64 : i32
    scf.if %184 {
      %185 = vector.extract_strided_slice %180 {offsets = [0, 0], sizes = [1, 32], strides = [1, 1]} : vector<16x32xf32> to vector<1x32xf32>
      %186 = vector.extract_strided_slice %180 {offsets = [8, 0], sizes = [1, 32], strides = [1, 1]} : vector<16x32xf32> to vector<1x32xf32>
      %187 = tpu.concatenate %185, %186 in 0 : vector<1x32xf32>, vector<1x32xf32> -> vector<2x32xf32>
      %188 = arith.truncf %187 : vector<2x32xf32> to vector<2x32xbf16>
      %c0_65 = arith.constant 0 : index
      %c0_66 = arith.constant 0 : index
      %c0_67 = arith.constant 0 : index
      %189 = vector.load %arg12[%c0_65, %c0_66, %c0_67] : memref<1x32x32xbf16, #tpu.memory_space<vmem>>, vector<1x32x32xbf16>
      %190 = vector.shape_cast %189 : vector<1x32x32xbf16> to vector<32x32xbf16>
      %cst_68 = arith.constant dense<0.000000e+00> : vector<2x32xf32>
      %191 = tpu.matmul %188, %190, %cst_68 {dimension_numbers = #tpu.dot_dimension_numbers<[1], [0], [0], [1], [0, 0, 1, 1], [], []>} : vector<2x32xbf16>, vector<32x32xbf16>, vector<2x32xf32> -> vector<2x32xf32>
      %c0_69 = arith.constant 0 : index
      %c0_70 = arith.constant 0 : index
      %c0_71 = arith.constant 0 : index
      %192 = vector.load %arg13[%c0_69, %c0_70, %c0_71] : memref<1x1x32xf32, #tpu.memory_space<vmem>>, vector<1x1x32xf32>
      %193 = vector.shape_cast %192 : vector<1x1x32xf32> to vector<1x32xf32>
      %194 = vector.broadcast %193 : vector<1x32xf32> to vector<2x32xf32>
      %195 = arith.addf %191, %194 : vector<2x32xf32>
      %196 = math.tanh %195 : vector<2x32xf32>
      %197 = arith.truncf %196 : vector<2x32xf32> to vector<2x32xbf16>
      %c0_72 = arith.constant 0 : index
      %c0_73 = arith.constant 0 : index
      %c0_74 = arith.constant 0 : index
      %198 = vector.load %arg14[%c0_72, %c0_73, %c0_74] : memref<1x32x16xbf16, #tpu.memory_space<vmem>>, vector<1x32x16xbf16>
      %199 = vector.shape_cast %198 : vector<1x32x16xbf16> to vector<32x16xbf16>
      %cst_75 = arith.constant dense<0.000000e+00> : vector<2x16xf32>
      %200 = tpu.matmul %197, %199, %cst_75 {dimension_numbers = #tpu.dot_dimension_numbers<[1], [0], [0], [1], [0, 0, 1, 1], [], []>} : vector<2x32xbf16>, vector<32x16xbf16>, vector<2x16xf32> -> vector<2x16xf32>
      %c0_76 = arith.constant 0 : index
      %c0_77 = arith.constant 0 : index
      %c0_78 = arith.constant 0 : index
      %201 = vector.load %arg15[%c0_76, %c0_77, %c0_78] : memref<1x1x16xf32, #tpu.memory_space<vmem>>, vector<1x1x16xf32>
      %202 = vector.shape_cast %201 : vector<1x1x16xf32> to vector<1x16xf32>
      %203 = vector.broadcast %202 : vector<1x16xf32> to vector<2x16xf32>
      %204 = arith.addf %200, %203 : vector<2x16xf32>
      %c0_79 = arith.constant 0 : index
      %c0_80 = arith.constant 0 : index
      %c0_81 = arith.constant 0 : index
      %205 = vector.load %arg16[%c0_79, %c0_80, %c0_81] : memref<1x2x16xf32, #tpu.memory_space<vmem>>, vector<1x2x16xf32>
      %206 = vector.shape_cast %205 : vector<1x2x16xf32> to vector<2x16xf32>
      %207 = vector.shape_cast %204 : vector<2x16xf32> to vector<1x2x16xf32>
      tpu.vector_store %arg16[%c0_79, %c0_80, %c0_81], %207 {strides = array<i32>} : memref<1x2x16xf32, #tpu.memory_space<vmem>>, vector<1x2x16xf32>,
    } else {
    }
    return
  }
  func.func @transform_0(%arg0: i32, %arg1: i32) -> (i32, i32, i32) {
    %c0_i32 = arith.constant 0 : i32
    %c0_i32_0 = arith.constant 0 : i32
    %c0_i32_1 = arith.constant 0 : i32
    return %arg0, %c0_i32, %c0_i32_0 : i32, i32, i32
  }
  func.func @transform_1(%arg0: i32, %arg1: i32) -> (i32, i32, i32) {
    %c0_i32 = arith.constant 0 : i32
    %c0_i32_0 = arith.constant 0 : i32
    %c0_i32_1 = arith.constant 0 : i32
    return %arg0, %c0_i32, %c0_i32_0 : i32, i32, i32
  }
  func.func @transform_2(%arg0: i32, %arg1: i32) -> (i32, i32, i32) {
    %c0_i32 = arith.constant 0 : i32
    %c0_i32_0 = arith.constant 0 : i32
    %c0_i32_1 = arith.constant 0 : i32
    return %arg0, %c0_i32, %c0_i32_0 : i32, i32, i32
  }
  func.func @transform_3(%arg0: i32, %arg1: i32) -> (i32, i32, i32) {
    %c0_i32 = arith.constant 0 : i32
    %c0_i32_0 = arith.constant 0 : i32
    %c0_i32_1 = arith.constant 0 : i32
    return %arg0, %c0_i32, %c0_i32_0 : i32, i32, i32
  }
  func.func @transform_4(%arg0: i32, %arg1: i32) -> (i32, i32, i32, i32) {
    %c0_i32 = arith.constant 0 : i32
    %c0_i32_0 = arith.constant 0 : i32
    %c0_i32_1 = arith.constant 0 : i32
    return %arg0, %arg1, %c0_i32, %c0_i32_0 : i32, i32, i32, i32
  }
  func.func @transform_5(%arg0: i32, %arg1: i32) -> (i32, i32, i32, i32) {
    %c0_i32 = arith.constant 0 : i32
    %c0_i32_0 = arith.constant 0 : i32
    %c0_i32_1 = arith.constant 0 : i32
    return %arg0, %arg1, %c0_i32, %c0_i32_0 : i32, i32, i32, i32
  }
  func.func @transform_6(%arg0: i32, %arg1: i32) -> (i32, i32, i32, i32) {
    %c0_i32 = arith.constant 0 : i32
    %c0_i32_0 = arith.constant 0 : i32
    %c0_i32_1 = arith.constant 0 : i32
    return %arg0, %arg1, %c0_i32, %c0_i32_0 : i32, i32, i32, i32
  }
  func.func @transform_7(%arg0: i32, %arg1: i32) -> (i32, i32, i32, i32) {
    %c0_i32 = arith.constant 0 : i32
    %c0_i32_0 = arith.constant 0 : i32
    %c0_i32_1 = arith.constant 0 : i32
    return %arg0, %arg1, %c0_i32, %c0_i32_0 : i32, i32, i32, i32
  }
  func.func @transform_8(%arg0: i32, %arg1: i32) -> (i32, i32, i32, i32) {
    %c0_i32 = arith.constant 0 : i32
    %c0_i32_0 = arith.constant 0 : i32
    %c0_i32_1 = arith.constant 0 : i32
    return %arg0, %arg1, %c0_i32, %c0_i32_0 : i32, i32, i32, i32
  }
  func.func @transform_9(%arg0: i32, %arg1: i32) -> (i32, i32, i32, i32) {
    %c0_i32 = arith.constant 0 : i32
    %c0_i32_0 = arith.constant 0 : i32
    %c0_i32_1 = arith.constant 0 : i32
    return %arg0, %arg1, %c0_i32, %c0_i32_0 : i32, i32, i32, i32
  }
  func.func @transform_10(%arg0: i32, %arg1: i32) -> (i32, i32, i32) {
    %c0_i32 = arith.constant 0 : i32
    %c0_i32_0 = arith.constant 0 : i32
    %c0_i32_1 = arith.constant 0 : i32
    return %arg0, %c0_i32, %c0_i32_0 : i32, i32, i32
  }
  func.func @transform_11(%arg0: i32, %arg1: i32) -> (i32, i32, i32) {
    %c0_i32 = arith.constant 0 : i32
    %c0_i32_0 = arith.constant 0 : i32
    %c0_i32_1 = arith.constant 0 : i32
    return %arg0, %c0_i32, %c0_i32_0 : i32, i32, i32
  }
  func.func @transform_12(%arg0: i32, %arg1: i32) -> (i32, i32, i32) {
    %c0_i32 = arith.constant 0 : i32
    %c0_i32_0 = arith.constant 0 : i32
    %c0_i32_1 = arith.constant 0 : i32
    return %arg0, %c0_i32, %c0_i32_0 : i32, i32, i32
  }
  func.func @transform_13(%arg0: i32, %arg1: i32) -> (i32, i32, i32) {
    %c0_i32 = arith.constant 0 : i32
    %c0_i32_0 = arith.constant 0 : i32
    %c0_i32_1 = arith.constant 0 : i32
    return %arg0, %c0_i32, %c0_i32_0 : i32, i32, i32
  }
  func.func @transform_14(%arg0: i32, %arg1: i32) -> (i32, i32, i32) {
    %c0_i32 = arith.constant 0 : i32
    %c0_i32_0 = arith.constant 0 : i32
    %c0_i32_1 = arith.constant 0 : i32
    return %arg0, %c0_i32, %c0_i32_0 : i32, i32, i32
  }
}

</mosaic_0001>

<bundles_post_ra>
// kernel: protein_text_model_forward.1
= control target key start
LH: loop header
LB: loop body
LE: loop exit
PB: predicated region body
PF: predicated region fallthrough
CT: control target
= control target key end

     0   :  { %s2334_s29 = smov 0   ;;  %s2336_s30 = smov 0   ;;  %s2621_s0 = inlined_call_operand.vmem [shape: s32[2,16,1], index: 0, kind: input, shape index: {}]   ;;  %s2622_s1 = inlined_call_operand.vmem [shape: f32[2,16,16], index: 1, kind: input, shape index: {}]   ;;  %s2623_s2 = inlined_call_operand.vmem [shape: bf16[2,64,32], index: 2, kind: input, shape index: {}]   ;;  %s2624_s3 = inlined_call_operand.vmem [shape: f32[2,18,32], index: 3, kind: input, shape index: {}]   ;;  %s2625_s4 = inlined_call_operand.vmem [shape: bf16[2,2,32,96], index: 4, kind: input, shape index: {}]   ;;  %s2626_s5 = inlined_call_operand.vmem [shape: bf16[2,2,32,32], index: 5, kind: input, shape index: {}]   ;;  %s2627_s6 = inlined_call_operand.vmem [shape: bf16[2,2,32,64], index: 6, kind: input, shape index: {}]   ;;  %s2628_s7 = inlined_call_operand.vmem [shape: bf16[2,2,64,32], index: 7, kind: input, shape index: {}]   ;;  %s2629_s8 = inlined_call_operand.vmem [shape: f32[2,2,9,32], index: 8, kind: input, shape index: {}]   ;;  %s2630_s9 = inlined_call_operand.vmem [shape: f32[2,2,1,64], index: 9, kind: input, shape index: {}]   ;;  %s2631_s10 = inlined_call_operand.vmem [shape: bf16[2,32,32], index: 10, kind: input, shape index: {}]   ;;  %s2632_s11 = inlined_call_operand.vmem [shape: f32[2,1,32], index: 11, kind: input, shape index: {}]   ;;  %s2633_s12 = inlined_call_operand.vmem [shape: bf16[2,32,16], index: 12, kind: input, shape index: {}]   ;;  %s2634_s13 = inlined_call_operand.vmem [shape: f32[2,1,16], index: 13, kind: input, shape index: {}]   ;;  %s2635_s14 = inlined_call_operand.vmem [shape: f32[2,2,16], index: 14, kind: output, shape index: {}]  }
   0x1   :  { %2643 = sst [smem:[#allocation12_spill]] %s2621_s0  ;;  %s2338_s15 = smov 0  }
   0x2   :  { %2644 = sst [smem:[#allocation13_spill]] %s2622_s1  ;;  %s2340_s16 = smov 0  }
   0x3   :  { %2645 = sst [smem:[#allocation14_spill]] %s2623_s2  ;;  %s2342_s17 = smov 0  }
   0x4   :  { %2646 = sst [smem:[#allocation15_spill]] %s2624_s3 }
   0x5   :  { %2647 = sst [smem:[#allocation16_spill]] %s2625_s4 }
   0x6   :  { %2648 = sst [smem:[#allocation17_spill]] %s2626_s5 }
   0x7   :  { %2649 = sst [smem:[#allocation18_spill]] %s2627_s6 }
   0x8   :  { %2650 = sst [smem:[#allocation19_spill]] %s2628_s7 }
   0x9   :  { %2651 = sst [smem:[#allocation20_spill]] %s2629_s8 }
   0xa   :  { %2652 = sst [smem:[#allocation21_spill]] %s2634_s13 }
   0xb   :  { %2653 = sst [smem:[#allocation22_spill]] %s2635_s14 }
   0xc LB: > { %2654 = sst [smem:[#allocation3_spill]] %s2222_s29  ;;  %s33_s18 = sadd.s32 1, %s2230_s15  ;;  %s2238_s17 = sphi %s2342_s17, %s24_s17   ;;  %s2234_s16 = sphi %s2340_s16, %s2685_s16   ;;  %s2230_s15 = sphi %s2338_s15, %s2684_s15   ;;  %s2226_s30 = sphi %s2336_s30, %s2683_s30   ;;  %s2222_s29 = sphi %s2334_s29, %s2682_s29  }
   0xd   : > { %2655 = sst [smem:[#allocation4_spill]] %s2230_s15  ;;  %s36_s19 = sadd.s32 1, %s2234_s16 }
   0xe   : > { %2656 = sst [smem:[#allocation5_spill]] %s2234_s16  ;;  %p34_p0 = scmp.ge.s32.totalorder %s33_s18, 2 }
   0xf   : > { %2657 = sst [smem:[#allocation6_spill]] %s2238_s17  ;;  %p1923_p1 = scmp.ge.s32.totalorder %s2238_s17, 1 }
  0x10   : > { %p584_p2 = scmp.lt.s32.totalorder %s2238_s17, 5  ;;  %s2687_s18 = smov (%p34_p0, %s33_s18), 0 }
  0x11   : > { %2658 = sst [smem:[#allocation7_spill]] %s2687_s18  ;;  %s2689_s19 = smov (!%p34_p0, %s36_s19), %s2234_s16 }
  0x12   : > { %p585_p3 = pnand %p1923_p1, %p584_p2  ;;  %p38_p4 = scmp.ge.s32.totalorder %s2689_s19, 2 }
  0x14   : > { %s2691_s19 = smov (%p38_p4, %s2689_s19), 0  ;;  %588 = sbr.rel (%p585_p3) target bundleno = 2828 (0xb0c), region = 76 }
  0x15   : > { %2659 = sst [smem:[#allocation8_spill]] %s2691_s19 }
  0x19   : > { %p712_p5 = scmp.lt.s32.totalorder %s2226_s30, 1  ;;  %p734_p6 = scmp.lt.s32.totalorder %s2222_s29, 1 }
  0x1a   : > { %s2660_s0 = sld [smem:[#allocation12_spill]] }
  0x1b   : > { %s2693_s30 = smov (!%p712_p5, %s2226_s30), 1  ;;  %s2661_s1 = sld [smem:[#allocation13_spill]] }
  0x1c   : > { %s735_s20 = scalar_select %p734_p6, %s2222_s29, 1 }
  0x1d   : > { %s2043_s21 = sshll.u32 %s2693_s30, 4  ;;  %s2045_s22 = sshll.u32 %s2693_s30, 5 }
  0x1e   : > { %s2663_s2 = sld [smem:[#allocation14_spill]]  ;;  %s2066_s15 = smul.u32 24, %s2693_s30 }
  0x1f   : > { %s1931_s17 = sshll.u32 %s735_s20, 2  ;;  %s1932_s29 = sshll.u32 %s2693_s30, 3 }
  0x20   : > { %s2375_s25 = scalar_lea.vmem %s2660_s0, %s2043_s21  ;;  %s2665_s3 = sld [smem:[#allocation15_spill]] }
  0x21   : > { %s2380_s28 = scalar_lea.vmem %s2661_s1, %s2043_s21  ;;  %s738_s24 = sadd.s32 %s1932_s29, %s1931_s17 }
  0x22   : > { %2662 = sst [smem:[#allocation9_spill]] %s2380_s28  ;;  %s1933_s0 = sshll.u32 %s738_s24, 2 }
  0x23   : > { %s1940_s26 = sshll.u32 %s735_s20, 3  ;;  %s2666_s4 = sld [smem:[#allocation16_spill]] }
  0x24   : > { %s2385_s16 = scalar_lea.vmem %s2663_s2, %s2045_s22  ;;  %s2667_s5 = sld [smem:[#allocation17_spill]] }
  0x25   : > { %2664 = sst [smem:[#allocation10_spill]] %s2385_s16  ;;  %s765_s14 = sadd.s32 %s2043_s21, %s1940_s26 }
  0x26   : > { %s2392_s23 = scalar_lea.vmem %s2665_s3, %s2066_s15  ;;  %s2669_s6 = sld [smem:[#allocation18_spill]] }
  0x27   : > { %s1942_s29 = sshll.u32 %s765_s14, 2  ;;  %s1943_s15 = sshll.u32 %s735_s20, 1 }
  0x28   : > { %s2670_s7 = sld [smem:[#allocation19_spill]]  ;;  %s1944_s27 = sshll.u32 %s2693_s30, 2 }
  0x29   : > { %s2397_s18 = scalar_lea.vmem %s2666_s4, %s1933_s0  ;;  %s774_s3 = sadd.s32 %s1944_s27, %s1943_s15 }
  0x2a   : > { %s2402_s2 = scalar_lea.vmem %s2667_s5, %s1933_s0  ;;  %s1946_s4 = sshll.u32 %s2693_s30, 1 }
  0x2b   : > { %2668 = sst [smem:[#allocation11_spill]] %s2402_s2  ;;  %s1945_s19 = sshll.u32 %s774_s3, 3 }
  0x2c   : > { %s2407_s13 = scalar_lea.vmem %s2669_s6, %s1933_s0  ;;  %s2416_s22 = sadd.s32 %s1946_s4, %s735_s20 }
  0x2d   : > { %s2671_s8 = sld [smem:[#allocation20_spill]]  ;;  %s791_s3 = scalar_lea.vmem %s2632_s11, %s2693_s30 }
  0x2e   : > { %s2412_s1 = scalar_lea.vmem %s2670_s7, %s1942_s29  ;;  %s2430_s29 = scalar_lea.vmem %s2631_s10, %s2043_s21 }
  0x2f   : > { %s2439_s2 = scalar_lea.vmem %s2633_s12, %s2043_s21  ;;  %s2672_s6 = sld [smem:[#allocation21_spill]] }
  0x30   : > { %s2673_s26 = sld [smem:[#allocation22_spill]] }
  0x31   : > { %s2674_s14 = sld [smem:[#allocation3_spill]] }
  0x33   : > { %s2421_s0 = scalar_lea.vmem %s2671_s8, %s1945_s19 }
  0x35   : > { %s799_s7 = scalar_lea.vmem %s2672_s6, %s2693_s30 }
  0x36   : > { %s2448_s8 = scalar_lea.vmem %s2673_s26, %s1946_s4 }
  0x37   : > { %p1952_p7 = scmp.ne.s32.totalorder %s2674_s14, 0 }
  0x38   : > { %s2675_s17 = sld [smem:[#allocation10_spill]] (!%p1952_p7) }
  0x39   : > { %808 = sbr.rel (%p1952_p7) target bundleno = 596 (0x254), region = 80 }
  0x3e   : > { %v809_v0 = vld [vmem:[%s2375_s25] sm:$0xff]  ;;  %v2051_v1 = vld [vmem:[%s2675_s17 + $0x18] sm:$0xff]  ;;  %v2240_v2 = vmov 0   ;;  %v810_v3 = vld [vmem:[%s2375_s25 + $0x8] sm:$0xff]  ;;  %v811_v7 = vlaneseq  ;;  %v2241_v11 = vmov 0.0   ;;  %vm859_vm2 = vcmask 523264  }
  0x3f   : > { %2126 = vset.pattern.permute.xlu0 %v2240_v2  ;;  %867 = vmatpush.bf16.msra.mxu0 %v2051_v1  ;;  %v2050_v4 = vld [vmem:[%s2675_s17 + $0x10] sm:$0xff]  ;;  %v2049_v5 = vld [vmem:[%s2675_s17 + $0x8] sm:$0xff]  ;;  %v2048_v6 = vld [vmem:[%s2675_s17] sm:$0xff]  ;;  %vm877_vm3 = vcmask 261120   ;;  %v2242_v23 = vmov 32.0  }
  0x40   : > { %814 = vperm.xlu0 %2126, %v809_v0   ;;  %v812_v9 = vand.u32 127, %v811_v7  ;;  %v832_v15 = vld [vmem:[%s2392_s23] sm:$0xff]  ;;  %v833_v19 = vld [vmem:[%s2392_s23 + $0x8] sm:$0xff]  ;;  %2127 = vrcp.f32 %v2242_v23  ;;  %v834_v50 = vld [vmem:[%s2392_s23 + $0x10] sm:$0x3] }
  0x41   : > { %v929_v55 = vperm.slane %v834_v50, 0  ;;  %v932_v58 = vperm.slane %v834_v50, 1 }
  0x43   : > { %868 = vmatpush.bf16.msra.mxu0 %v2050_v4 }
  0x46   : > { %v2128_v24 = vpop.eup %2127 }
  0x47   : > { %869 = vmatpush.bf16.msra.mxu0 %v2049_v5  ;;  %v885_v25 = vmul.f32 32.0, %v2128_v24  ;;  %vm889_vm4 = vweird.f32 %v2128_v24 }
  0x48   : > { %817 = vperm.xlu0 %2126, %v810_v3  }
  0x49   : > { %v886_v26 = vsub.f32 1.0, %v885_v25 }
  0x4b   : > { %870 = vmatpush.bf16.msra.mxu0 %v2048_v6  ;;  %v887_v27 = vmul.f32 %v2128_v24, %v886_v26 }
  0x4d   : > { %v888_v28 = vadd.f32 %v2128_v24, %v887_v27 }
  0x4f   : > { %v890_v29 = vsel %vm889_vm4, %v2128_v24, %v888_v28 }
  0xb2   : > { %v815_v8 = vpop.permute.xlu0 %814 }
  0xb3   : > { %vm819_vm0 = vcmp.eq.s32.totalorder %v815_v8, %v812_v9 }
  0xb4   : > { %v821_v12 = vsel %vm819_vm0, 1.0, %v2241_v11 }
  0xba   : > { %v818_v10 = vpop.permute.xlu0 %817 }
  0xbb   : > { %vm820_vm1 = vcmp.eq.s32.totalorder %v818_v10, %v812_v9 }
  0xbc   : > { %v822_v13 = vsel %vm820_vm1, 1.0, %v2241_v11 }
  0xbd   : > { %v823_v14 = vpack.c.bf16 %v822_v13, %v821_v12 }
  0xbf   : > { %1969 = vmatmul.msk.bf16.vlgmr.msra.gmra.mxu0 %vm859_vm2, %v823_v14 }
 0x13c   : > { %v872_v16 = vpop.f32.mrf.mxu0 }
 0x13d   : > { %v873_v17 = vadd.f32 %v872_v16, %v832_v15 }
 0x13f   : > { %v878_v18 = vsel %vm877_vm3, %v873_v17, 0.0 }
 0x140   : > { %879 = vadd.xlane.f32.xlu1 %v878_v18 }
 0x144   : > { %v874_v20 = vpop.f32.mrf.mxu0 }
 0x145   : > { %v875_v21 = vadd.f32 %v874_v20, %v833_v19 }
 0x147   : > { %v881_v22 = vsel %vm877_vm3, %v875_v21, 0.0 }
 0x148   : > { %882 = vadd.xlane.f32.xlu1 %v881_v22 }
 0x1b3   : > { %v880_v30 = vpop.xlane.xlu1 %879 }
 0x1b4   : > { %v891_v31 = vmul.f32 %v890_v29, %v880_v30 }
 0x1b6   : > { %v893_v32 = vsub.f32 %v873_v17, %v891_v31 }
 0x1b8   : > { %v895_v33 = vmul.f32 %v893_v32, %v893_v32 }
 0x1ba   : > { %v897_v34 = vsel %vm877_vm3, %v895_v33, 0.0 }
 0x1bb   : > { %898 = vadd.xlane.f32.xlu2 %v897_v34  ;;  %v883_v35 = vpop.xlane.xlu1 %882 }
 0x1bc   : > { %v892_v36 = vmul.f32 %v890_v29, %v883_v35 }
 0x1be   : > { %v894_v37 = vsub.f32 %v875_v21, %v892_v36 }
 0x1c0   : > { %v896_v38 = vmul.f32 %v894_v37, %v894_v37 }
 0x1c2   : > { %v900_v39 = vsel %vm877_vm3, %v896_v38, 0.0 }
 0x1c3   : > { %901 = vadd.xlane.f32.xlu2 %v900_v39 }
 0x22e   : > { %v899_v40 = vpop.xlane.xlu2 %898 }
 0x22f   : > { %v903_v41 = vmul.f32 %v899_v40, %v890_v29 }
 0x231   : > { %v905_v42 = vadd.f32 1e-12, %v903_v41 }
 0x233   : > { %2129 = vrsqrt.f32 %v905_v42  ;;  %vm913_vm6 = vweird.f32 %v905_v42 }
 0x236   : > { %v902_v43 = vpop.xlane.xlu2 %901 }
 0x237   : > { %v904_v44 = vmul.f32 %v902_v43, %v890_v29 }
 0x239   : > { %v2130_v45 = vpop.eup %2129  ;;  %v906_v46 = vadd.f32 1e-12, %v904_v44 }
 0x23a   : > { %v908_v47 = vmul.f32 %v2130_v45, %v905_v42  ;;  %vm914_vm5 = vweird.f32 %v2130_v45 }
 0x23b   : > { %2131 = vrsqrt.f32 %v906_v46  ;;  %vm915_vm7 = vmor %vm913_vm6, %vm914_vm5  ;;  %vm923_vm9 = vweird.f32 %v906_v46 }
 0x23c   : > { %v909_v48 = vmul.f32 %v2130_v45, %v908_v47 }
 0x23e   : > { %v910_v49 = vmul.f32 0.5, %v909_v48 }
 0x240   : > { %v911_v51 = vsub.f32 1.5, %v910_v49 }
 0x241   : > { %v2132_v52 = vpop.eup %2131 }
 0x242   : > { %v912_v53 = vmul.f32 %v2130_v45, %v911_v51  ;;  %v918_v54 = vmul.f32 %v2132_v52, %v906_v46  ;;  %vm924_vm8 = vweird.f32 %v2132_v52 }
 0x243   : > { %vm925_vm10 = vmor %vm923_vm9, %vm924_vm8 }
 0x244   : > { %v916_v56 = vsel %vm915_vm7, %v2130_v45, %v912_v53  ;;  %v919_v57 = vmul.f32 %v2132_v52, %v918_v54 }
 0x245   : > { %v927_v59 = vmul.f32 %v916_v56, %v893_v32 }
 0x246   : > { %v920_v60 = vmul.f32 0.5, %v919_v57 }
 0x247   : > { %v930_v61 = vmul.f32 %v929_v55, %v927_v59 }
 0x248   : > { %v921_v62 = vsub.f32 1.5, %v920_v60 }
 0x249   : > { %v933_v63 = vadd.f32 %v932_v58, %v930_v61 }
 0x24a   : > { %v922_v0 = vmul.f32 %v2132_v52, %v921_v62 }
 0x24b   : > { %935 = vst.msk [vmem:[#allocation2] sm:$0xff] %vm877_vm3, %v933_v63 }
 0x24c   : > { %v926_v1 = vsel %vm925_vm10, %v2132_v52, %v922_v0 }
 0x24d   : > { %v928_v2 = vmul.f32 %v926_v1, %v894_v37 }
 0x24f   : > { %v931_v3 = vmul.f32 %v929_v55, %v928_v2 }
 0x251   : > { %v934_v4 = vadd.f32 %v932_v58, %v931_v3 }
 0x253   : > { %936 = vst.msk [vmem:[#allocation2 + $0x8] sm:$0xff] %vm877_vm3, %v934_v4 }
 0x254 PF: > { %v2053_v5 = vld [vmem:[%s2397_s18 + $0x8] sm:$0xff]  ;;  %v2052_v6 = vld [vmem:[%s2397_s18] sm:$0xff]  ;;  %s2243_s4 = smov 32   ;;  %vm960_vm11 = vcmask 261120   ;;  %s2244_s6 = smov 72   ;;  %vm1013_vm12 = vcmask 64512  }
 0x255   : > { %v2469_v7 = vld [vmem:[%s2421_s0] sm:$0xff]  ;;  %970 = vmatpush.bf16.msra.mxu0 %v2053_v5  ;;  %s2245_s21 = smov 88   ;;  %s2246_s25 = smov 96   ;;  %vm1034_vm13 = vcmask 130048   ;;  %vm1312_vm14 = vcmask 195584   ;;  %vm1499_vm6 = vcmask 523264  }
 0x256   : > { %v2471_v8 = vld [vmem:[#allocation2] sm:$0xff]  ;;  %v983_v10 = vperm.slane %v2469_v7, 1  ;;  %v978_v16 = vperm.slane %v2469_v7, 0  ;;  %s2247_s23 = smov 104   ;;  %s2248_s18 = smov 120   ;;  %v992_v30 = vperm.slane %v2469_v7, 2 }
 0x257   : > { %s2249_s26 = smov 80   ;;  %s2250_s15 = smov 112  }
 0x258   : > { %985 = vrot.lane.b32.xlu0 %v983_v10, %s2243_s4  ;;  %s2251_s24 = smov 64   ;;  %s2676_s20 = sld [smem:[#allocation9_spill]] }
 0x259   : > { %971 = vmatpush.bf16.msra.mxu0 %v2052_v6  ;;  %s2252_s27 = smov 56   ;;  %s2253_s5 = smov 40  }
 0x25a   : > { %v2473_v9 = vld [vmem:[#allocation2 + $0x8] sm:$0xff]  ;;  %s2254_s19 = smov 48   ;;  %s2677_s16 = sld [smem:[#allocation11_spill]] }
 0x25b   : > { %v943_v11 = vpack.c.bf16 %v2473_v9, %v2471_v8  ;;  %s2255_s28 = smov 16   ;;  %s2256_s14 = smov 8  }
 0x25c   : > { %s2257_s17 = smov 24  }
 0x25d   : > { %1978 = vmatmul.msk.bf16.vlgmr.msra.gmra.mxu0 %vm960_vm11, %v943_v11 }
 0x25e   : > { %v939_v42 = vld [vmem:[%s2676_s20] sm:$0xff]  ;;  %v940_v48 = vld [vmem:[%s2676_s20 + $0x8] sm:$0xff] }
 0x2ca   : > { %v986_v13 = vpop.permute.xlu0 %985 }
 0x2da   : > { %v2479_v12 = vpop.f32.mrf.mxu0 }
 0x2db   : > { %v988_v14 = vadd.f32 %v986_v13, %v2479_v12  ;;  %v979_v21 = vadd.f32 %v978_v16, %v2479_v12 }
 0x2dd   : > { %v990_v17 = vpack.c.bf16 %v988_v14, %v988_v14  ;;  %v981_v26 = vpack.c.bf16 %v979_v21, %v979_v21 }
 0x2df   : > { %v1008_v22 = vunpack.c.l.b16 %v990_v17  ;;  %v1003_v28 = vunpack.c.l.b16 %v981_v26 }
 0x2e2   : > { %v2482_v15 = vpop.f32.mrf.mxu0 }
 0x2e3   : > { %v989_v18 = vadd.f32 %v986_v13, %v2482_v15  ;;  %v980_v19 = vadd.f32 %v978_v16, %v2482_v15 }
 0x2e5   : > { %v991_v20 = vpack.c.bf16 %v989_v18, %v989_v18  ;;  %v982_v24 = vpack.c.bf16 %v980_v19, %v980_v19 }
 0x2e7   : > { %v1009_v23 = vunpack.c.l.b16 %v991_v20  ;;  %v1004_v27 = vunpack.c.l.b16 %v982_v24 }
 0x2e9   : > { %v1010_v25 = vpack.c.b16 %v1009_v23, %v1008_v22  ;;  %v1005_v29 = vpack.c.b16 %v1004_v27, %v1003_v28 }
 0x2eb   : > { %1219 = vrot.lane.b32.xlu2 %v1010_v25, %s2244_s6  ;;  %1085 = vrot.lane.b32.xlu1 %v1010_v25, %s2245_s21  ;;  %s2678_s6 = scalar_lea.vmem %s2630_s9, %s2416_s22 }
 0x2ec   : > { %1011 = vrot.lane.b32.xlu0 %v1010_v25, %s2246_s25 }
 0x2f3   : > { %1217 = vrot.lane.b32.xlu2 %v1005_v29, %s2247_s23  ;;  %1083 = vrot.lane.b32.xlu1 %v1005_v29, %s2248_s18 }
 0x2f4   : > { %1152 = vrot.lane.b32.xlu0 %v1010_v25, %s2249_s26 }
 0x2fb   : > { %1150 = vrot.lane.b32.xlu1 %v1005_v29, %s2250_s15 }
 0x303   : > { %994 = vrot.lane.b32.xlu1 %v992_v30, %s2251_s24 }
 0x345   : > { %v1220_v31 = vpop.permute.xlu2 %1219 }
 0x346   : > { %v1225_v36 = vsel %vm1013_vm12, %v1220_v31, 0 }
 0x34d   : > { %v1218_v41 = vpop.permute.xlu2 %1217 }
 0x35d   : > { %v1086_v32 = vpop.permute.xlu1 %1085 }
 0x35e   : > { %v1012_v33 = vpop.permute.xlu0 %1011  ;;  %v1091_v34 = vsel %vm1013_vm12, %v1086_v32, 0 }
 0x35f   : > { %v1018_v35 = vsel %vm1013_vm12, %v1012_v33, 0  ;;  %1100 = vmatpush.bf16.xpose.msra.mxu3 %v1091_v34 }
 0x360   : > { %1027 = vmatpush.bf16.xpose.msra.mxu1 %v1018_v35 }
 0x365   : > { %v1084_v37 = vpop.permute.xlu1 %1083 }
 0x366   : > { %v1153_v38 = vpop.permute.xlu0 %1152  ;;  %1981 = vmatmul.msk.bf16.vlgmr.msra.gmra.mxu3 %vm1013_vm12, %v1084_v37 }
 0x367   : > { %1234 = vmatpush.bf16.xpose.msrb.mxu3 %v1225_v36  ;;  %1979 = vmatmul.msk.bf16.vlgmr.msra.gmra.mxu1 %vm1013_vm12, %v1005_v29  ;;  %v1158_v39 = vsel %vm1013_vm12, %v1153_v38, 0 }
 0x368   : > { %1167 = vmatpush.bf16.xpose.msrb.mxu0 %v1158_v39 }
 0x36d   : > { %v1151_v40 = vpop.permute.xlu1 %1150 }
 0x36f   : > { %1983 = vmatmul.msk.bf16.vlgmr.msrb.gmra.mxu0 %vm1013_vm12, %v1151_v40 }
 0x375   : > { %v995_v59 = vpop.permute.xlu1 %994 }
 0x376   : > { %1985 = vmatmul.msk.bf16.vlgmr.msrb.gmra.mxu3 %vm1013_vm12, %v1218_v41  ;;  %v997_v63 = vadd.f32 %v995_v59, %v2479_v12  ;;  %v998_v0 = vadd.f32 %v995_v59, %v2482_v15 }
 0x378   : > { %v999_v3 = vpack.c.bf16 %v997_v63, %v997_v63  ;;  %v1000_v4 = vpack.c.bf16 %v998_v0, %v998_v0 }
 0x37a   : > { %v1060_v6 = vunpack.c.l.b16 %v999_v3  ;;  %v1061_v10 = vunpack.c.l.b16 %v1000_v4 }
 0x37c   : > { %v2515_v14 = vpack.c.b16 %v1061_v10, %v1060_v6 }
 0x3e4   : > { %v1029_v43 = vpop.f32.mrf.mxu1 }
 0x3e5   : > { %v1030_v44 = vadd.f32 %v1029_v43, %v939_v42 }
 0x3e7   : > { %v1035_v45 = vsel %vm1034_vm13, %v1030_v44, -inf }
 0x3e8   : > { %1036 = vmax.xlane.f32.xlu2 %v1035_v45 }
 0x3e9   : > { %v1102_v46 = vpop.f32.mrf.mxu3 }
 0x3ea   : > { %v1103_v47 = vadd.f32 %v1102_v46, %v939_v42 }
 0x3ec   : > { %v1031_v49 = vpop.f32.mrf.mxu1  ;;  %v1169_v50 = vpop.f32.mrf.mxu0  ;;  %v1107_v51 = vsel %vm1034_vm13, %v1103_v47, -inf }
 0x3ed   : > { %v1032_v52 = vadd.f32 %v1031_v49, %v940_v48  ;;  %v2502_v53 = vadd.f32 %v1169_v50, %v939_v42  ;;  %1108 = vmax.xlane.f32.xlu1 %v1107_v51 }
 0x3ef   : > { %v1038_v54 = vsel %vm1034_vm13, %v1032_v52, -inf  ;;  %v1174_v55 = vsel %vm1034_vm13, %v2502_v53, -inf }
 0x3f0   : > { %1039 = vmax.xlane.f32.xlu0 %v1038_v54  ;;  %1175 = vmax.xlane.f32.xlu2 %v1174_v55 }
 0x3f1   : > { %v1104_v56 = vpop.f32.mrf.mxu3 }
 0x3f2   : > { %v1105_v57 = vadd.f32 %v1104_v56, %v940_v48 }
 0x3f4   : > { %v1171_v58 = vpop.f32.mrf.mxu0  ;;  %v1110_v62 = vsel %vm1034_vm13, %v1105_v57, -inf }
 0x3f5   : > { %v2507_v60 = vadd.f32 %v1171_v58, %v940_v48 }
 0x3f7   : > { %v1177_v61 = vsel %vm1034_vm13, %v2507_v60, -inf }
 0x3f8   : > { %1178 = vmax.xlane.f32.xlu0 %v1177_v61  ;;  %1111 = vmax.xlane.f32.xlu2 %v1110_v62 }
 0x3f9   : > { %v1236_v1 = vpop.f32.mrf.mxu3 }
 0x3fa   : > { %v1237_v2 = vadd.f32 %v1236_v1, %v939_v42 }
 0x3fc   : > { %v1241_v5 = vsel %vm1034_vm13, %v1237_v2, -inf }
 0x400   : > { %1242 = vmax.xlane.f32.xlu2 %v1241_v5 }
 0x401   : > { %v1238_v11 = vpop.f32.mrf.mxu3 }
 0x402   : > { %v1239_v13 = vadd.f32 %v1238_v11, %v940_v48 }
 0x404   : > { %v1244_v16 = vsel %vm1034_vm13, %v1239_v13, -inf }
 0x405   : > { %1245 = vmax.xlane.f32.xlu0 %v1244_v16 }
 0x406   : > { %1130 = vrot.lane.b32.xlu1 %v2515_v14, %s2252_s27 }
 0x419   : > { %1063 = vrot.lane.b32.xlu0 %v2515_v14, %s2251_s24 }
 0x45b   : > { %v1037_v12 = vpop.xlane.xlu2 %1036 }
 0x45c   : > { %v1041_v15 = vsub.f32 %v1030_v44, %v1037_v12 }
 0x45e   : > { %v1043_v17 = vmul.f32 1.442695, %v1041_v15 }
 0x460   : > { %2150 = vpow2.f32 %v1043_v17  ;;  %v1109_v18 = vpop.xlane.xlu1 %1108 }
 0x461   : > { %v1113_v19 = vsub.f32 %v1103_v47, %v1109_v18 }
 0x463   : > { %v1115_v20 = vmul.f32 1.442695, %v1113_v19  ;;  %v1040_v21 = vpop.xlane.xlu0 %1039  ;;  %v1176_v22 = vpop.xlane.xlu2 %1175 }
 0x464   : > { %v1042_v23 = vsub.f32 %v1032_v52, %v1040_v21  ;;  %v1180_v39 = vsub.f32 %v2502_v53, %v1176_v22 }
 0x465   : > { %2152 = vpow2.f32 %v1115_v20 }
 0x466   : > { %v2151_v24 = vpop.eup %2150  ;;  %v1045_v25 = vmul.f32 1.442695, %v1042_v23  ;;  %v1182_v43 = vmul.f32 1.442695, %v1180_v39 }
 0x467   : > { %v1047_v26 = vsel %vm1034_vm13, %v2151_v24, 0.0 }
 0x468   : > { %2154 = vpow2.f32 %v1045_v25  ;;  %1048 = vadd.xlane.f32.xlu1 %v1047_v26 }
 0x46b   : > { %v1112_v27 = vpop.xlane.xlu2 %1111  ;;  %v2522_v28 = vpop.eup %2152 }
 0x46c   : > { %v1114_v29 = vsub.f32 %v1105_v57, %v1112_v27  ;;  %v1119_v33 = vsel %vm1034_vm13, %v2522_v28, 0.0  ;;  %v1179_v34 = vpop.xlane.xlu0 %1178 }
 0x46d   : > { %v1181_v46 = vsub.f32 %v2507_v60, %v1179_v34 }
 0x46e   : > { %v2155_v30 = vpop.eup %2154  ;;  %v1117_v31 = vmul.f32 1.442695, %v1114_v29 }
 0x46f   : > { %v1050_v32 = vsel %vm1034_vm13, %v2155_v30, 0.0  ;;  %v1184_v49 = vmul.f32 1.442695, %v1181_v46 }
 0x470   : > { %1051 = vadd.xlane.f32.xlu2 %v1050_v32  ;;  %1120 = vadd.xlane.f32.xlu1 %v1119_v33  ;;  %2156 = vpow2.f32 %v1117_v31 }
 0x473   : > { %v1243_v35 = vpop.xlane.xlu2 %1242 }
 0x474   : > { %v1247_v36 = vsub.f32 %v1237_v2, %v1243_v35 }
 0x476   : > { %v1249_v37 = vmul.f32 1.442695, %v1247_v36  ;;  %v2157_v38 = vpop.eup %2156 }
 0x477   : > { %v1122_v40 = vsel %vm1034_vm13, %v2157_v38, 0.0 }
 0x478   : > { %2158 = vpow2.f32 %v1249_v37  ;;  %v1246_v41 = vpop.xlane.xlu0 %1245  ;;  %1123 = vadd.xlane.f32.xlu2 %v1122_v40  ;;  %v1131_v54 = vpop.permute.xlu1 %1130  ;;  %v2055_v37 = vld [vmem:[%s2677_s16 + $0x8] sm:$0xff] }
 0x479   : > { %v1248_v42 = vsub.f32 %v1239_v13, %v1246_v41  ;;  %1342 = vmatpush.bf16.msra.mxu0 %v2055_v37 }
 0x47b   : > { %v1251_v44 = vmul.f32 1.442695, %v1248_v42 }
 0x47d   : > { %2160 = vpow2.f32 %v1251_v44 }
 0x47e   : > { %v2159_v45 = vpop.eup %2158  ;;  %2162 = vpow2.f32 %v1182_v43 }
 0x47f   : > { %v1253_v47 = vsel %vm1034_vm13, %v2159_v45, 0.0  ;;  %2164 = vpow2.f32 %v1184_v49 }
 0x480   : > { %1254 = vadd.xlane.f32.xlu2 %v1253_v47 }
 0x483   : > { %v2161_v48 = vpop.eup %2160 }
 0x484   : > { %v1256_v50 = vsel %vm1034_vm13, %v2161_v48, 0.0  ;;  %v2163_v51 = vpop.eup %2162 }
 0x485   : > { %1257 = vadd.xlane.f32.xlu0 %v1256_v50  ;;  %v1186_v52 = vsel %vm1034_vm13, %v2163_v51, 0.0  ;;  %v2165_v55 = vpop.eup %2164 }
 0x486   : > { %v1189_v56 = vsel %vm1034_vm13, %v2165_v55, 0.0 }
 0x488   : > { %1187 = vadd.xlane.f32.xlu2 %v1186_v52 }
 0x489   : > { %1264 = vrot.lane.b32.xlu1 %v2515_v14, %s2253_s5 }
 0x48b   : > { %v1064_v53 = vpop.permute.xlu0 %1063 }
 0x48c   : > { %1076 = vmatpush.bf16.msra.mxu2 %v1064_v53 }
 0x490   : > { %1143 = vmatpush.bf16.msrb.mxu2 %v1131_v54  ;;  %1190 = vadd.xlane.f32.xlu2 %v1189_v56 }
 0x4a8   : > { %1197 = vrot.lane.b32.xlu2 %v2515_v14, %s2254_s19 }
 0x4db   : > { %v1049_v57 = vpop.xlane.xlu1 %1048 }
 0x4dc   : > { %2166 = vrcp.f32 %v1049_v57 }
 0x4e2   : > { %v2167_v59 = vpop.eup %2166 }
 0x4e3   : > { %v1052_v58 = vpop.xlane.xlu2 %1051  ;;  %v1055_v62 = vmul.f32 %v2167_v59, %v2151_v24  ;;  %v1121_v1 = vpop.xlane.xlu1 %1120 }
 0x4e4   : > { %2168 = vrcp.f32 %v1052_v58 }
 0x4ea   : > { %v2169_v60 = vpop.eup %2168 }
 0x4eb   : > { %v1124_v61 = vpop.xlane.xlu2 %1123  ;;  %v1056_v63 = vmul.f32 %v2169_v60, %v2155_v30 }
 0x4ec   : > { %2170 = vrcp.f32 %v1124_v61 }
 0x4ed   : > { %v1057_v0 = vpack.c.bf16 %v1056_v63, %v1055_v62  ;;  %2172 = vrcp.f32 %v1121_v1 }
 0x4ef   : > { %1980 = vmatmul.msk.bf16.vlgmr.msra.gmra.mxu2 %vm1034_vm13, %v1057_v0  ;;  %v2258_v0 = vmov 32.0  }
 0x4f2   : > { %v2171_v3 = vpop.eup %2170 }
 0x4f3   : > { %v1255_v2 = vpop.xlane.xlu2 %1254  ;;  %v2173_v4 = vpop.eup %2172  ;;  %v1128_v5 = vmul.f32 %v2171_v3, %v2157_v38  ;;  %v2054_v38 = vld [vmem:[%s2677_s16] sm:$0xff] }
 0x4f4   : > { %v1127_v10 = vmul.f32 %v2173_v4, %v2522_v28  ;;  %1343 = vmatpush.bf16.msra.mxu0 %v2054_v38  ;;  %v1403_v38 = vperm.slane %v2469_v7, 5 }
 0x4f6   : > { %v1129_v14 = vpack.c.bf16 %v1128_v5, %v1127_v10 }
 0x4f8   : > { %v1258_v13 = vpop.xlane.xlu0 %1257 }
 0x4f9   : > { %2174 = vrcp.f32 %v1258_v13 }
 0x4fa   : > { %2176 = vrcp.f32 %v1255_v2 }
 0x4fb   : > { %v1265_v6 = vpop.permute.xlu1 %1264  ;;  %v1188_v11 = vpop.xlane.xlu2 %1187 }
 0x4fc   : > { %1277 = vmatpush.bf16.msra.mxu2 %v1265_v6  ;;  %2178 = vrcp.f32 %v1188_v11 }
 0x4ff   : > { %1982 = vmatmul.msk.bf16.vlgmr.msrb.gmra.mxu2 %vm1034_vm13, %v1129_v14  ;;  %v2175_v12 = vpop.eup %2174 }
 0x500   : > { %v2177_v15 = vpop.eup %2176  ;;  %v1262_v18 = vmul.f32 %v2175_v12, %v2161_v48 }
 0x501   : > { %v1261_v20 = vmul.f32 %v2177_v15, %v2159_v45 }
 0x502   : > { %v2179_v17 = vpop.eup %2178 }
 0x503   : > { %v1191_v16 = vpop.xlane.xlu2 %1190  ;;  %v1194_v21 = vmul.f32 %v2179_v17, %v2163_v51  ;;  %v1263_v24 = vpack.c.bf16 %v1262_v18, %v1261_v20  ;;  %v2057_v18 = vld [vmem:[%s2407_s13 + $0x8] sm:$0xff] }
 0x504   : > { %2180 = vrcp.f32 %v1191_v16 }
 0x505   : > { %2182 = vrcp.f32 %v2258_v0 }
 0x50a   : > { %v2181_v19 = vpop.eup %2180 }
 0x50b   : > { %v1195_v22 = vmul.f32 %v2181_v19, %v2165_v55  ;;  %v1198_v23 = vpop.permute.xlu2 %1197  ;;  %v1320_v55 = vperm.slane %v2469_v7, 3  ;;  %v2183_v1 = vpop.eup %2182 }
 0x50c   : > { %1210 = vmatpush.bf16.msrb.mxu1 %v1198_v23  ;;  %v1359_v2 = vmul.f32 32.0, %v2183_v1  ;;  %vm1363_vm15 = vweird.f32 %v2183_v1 }
 0x50d   : > { %v1196_v25 = vpack.c.bf16 %v1195_v22, %v1194_v21  ;;  %v2056_v21 = vld [vmem:[%s2407_s13] sm:$0xff] }
 0x50e   : > { %v1360_v3 = vsub.f32 1.0, %v1359_v2 }
 0x50f   : > { %1984 = vmatmul.msk.bf16.vlgmr.msrb.gmra.mxu1 %vm1034_vm13, %v1196_v25  ;;  %1986 = vmatmul.msk.bf16.vlgmr.msra.gmra.mxu2 %vm1034_vm13, %v1263_v24 }
 0x510   : > { %v1361_v4 = vmul.f32 %v2183_v1, %v1360_v3  ;;  %1439 = vmatpush.bf16.msra.mxu1 %v2057_v18 }
 0x512   : > { %v1362_v5 = vadd.f32 %v2183_v1, %v1361_v4 }
 0x514   : > { %1440 = vmatpush.bf16.msra.mxu1 %v2056_v21 }
 0x572   : > { %v1078_v26 = vpop.f32.mrf.mxu2 }
 0x57a   : > { %v1080_v27 = vpop.f32.mrf.mxu2 }
 0x582   : > { %v1145_v28 = vpop.f32.mrf.mxu2 }
 0x58a   : > { %v1147_v30 = vpop.f32.mrf.mxu2 }
 0x58b   : > { %v2138_v34 = vpack.i.bf16 %v1147_v30, %v1145_v28 }
 0x58c   : > { %v1212_v29 = vpop.f32.mrf.mxu1 }
 0x592   : > { %v1279_v33 = vpop.f32.mrf.mxu2 }
 0x594   : > { %v1214_v31 = vpop.f32.mrf.mxu1 }
 0x595   : > { %v2133_v32 = vpack.i.bf16 %v1214_v31, %v1212_v29 }
 0x597   : > { %2134 = vrot.lane.b32.xlu1 %v2133_v32, %s2255_s28 }
 0x59a   : > { %v1281_v35 = vpop.f32.mrf.mxu2 }
 0x59b   : > { %v2143_v36 = vpack.i.bf16 %v1281_v35, %v1279_v33 }
 0x59f   : > { %2139 = vrot.lane.b32.xlu1 %v2138_v34, %s2256_s14 }
 0x5a7   : > { %2144 = vrot.lane.b32.xlu1 %v2143_v36, %s2257_s17 }
 0x609   : > { %v2135_v39 = vpop.permute.xlu1 %2134 }
 0x60a   : > { %v2137_v45 = vunpack.i.h.bf16 %v2135_v39  ;;  %v2136_v46 = vunpack.i.l.bf16 %v2135_v39 }
 0x611   : > { %v2140_v40 = vpop.permute.xlu1 %2139 }
 0x612   : > { %v2142_v41 = vunpack.i.h.bf16 %v2140_v40  ;;  %v2141_v42 = vunpack.i.l.bf16 %v2140_v40 }
 0x614   : > { %v1309_v43 = vsel %vm1013_vm12, %v1080_v27, %v2142_v41  ;;  %v1308_v44 = vsel %vm1013_vm12, %v1078_v26, %v2141_v42  ;;  %v1406_v42 = vperm.slane %v2469_v7, 6 }
 0x615   : > { %v1310_v50 = vsel %vm1034_vm13, %v1308_v44, %v2136_v46  ;;  %v1311_v51 = vsel %vm1034_vm13, %v1309_v43, %v2137_v45 }
 0x619   : > { %v2145_v47 = vpop.permute.xlu1 %2144 }
 0x61a   : > { %v2147_v48 = vunpack.i.h.bf16 %v2145_v47  ;;  %v2146_v49 = vunpack.i.l.bf16 %v2145_v47 }
 0x61c   : > { %v1313_v52 = vsel %vm1312_vm14, %v1310_v50, %v2146_v49  ;;  %v1314_v53 = vsel %vm1312_vm14, %v1311_v51, %v2147_v48  ;;  %v2061_v49 = vld [vmem:[%s2412_s1 + $0x18] sm:$0xff]  ;;  %v2060_v50 = vld [vmem:[%s2412_s1 + $0x10] sm:$0xff]  ;;  %v2059_v51 = vld [vmem:[%s2412_s1 + $0x8] sm:$0xff] }
 0x61d   : > { %v1315_v54 = vpack.c.bf16 %v1314_v53, %v1313_v52  ;;  %1507 = vmatpush.bf16.msra.mxu3 %v2061_v49  ;;  %v2148_v52 = vld [vmem:[%s2678_s6] ss:$0 sm:$0xff] }
 0x61e   : > { %v2058_v53 = vld [vmem:[%s2412_s1] sm:$0xff]  ;;  %s2679_s1 = sld [smem:[#allocation3_spill]] }
 0x61f   : > { %1995 = vmatmul.msk.bf16.vlgmr.msra.gmra.mxu0 %vm960_vm11, %v1315_v54 }
 0x621   : > { %1508 = vmatpush.bf16.msra.mxu3 %v2060_v50 }
 0x624   : > { %p2022_p8 = scmp.ne.s32.totalorder %s2679_s1, 1 }
 0x625   : > { %1509 = vmatpush.bf16.msra.mxu3 %v2059_v51  ;;  %v2149_v51 = vld [vmem:[%s2421_s0 + $0x8] ss:$0 sm:$0xff] }
 0x629   : > { %1510 = vmatpush.bf16.msra.mxu3 %v2058_v53 }
 0x69c   : > { %v1345_v56 = vpop.f32.mrf.mxu0 }
 0x69d   : > { %v1346_v57 = vadd.f32 %v1345_v56, %v1320_v55 }
 0x69f   : > { %v1350_v58 = vadd.f32 %v1346_v57, %v2471_v8  ;;  %v2553_v8 = vsel %vm1363_vm15, %v2183_v1, %v1362_v5 }
 0x6a1   : > { %v1352_v59 = vsel %vm960_vm11, %v1350_v58, 0.0 }
 0x6a2   : > { %1353 = vadd.xlane.f32.xlu0 %v1352_v59 }
 0x6a4   : > { %v1347_v60 = vpop.f32.mrf.mxu0 }
 0x6a5   : > { %v1348_v61 = vadd.f32 %v1347_v60, %v1320_v55 }
 0x6a7   : > { %v1351_v62 = vadd.f32 %v1348_v61, %v2473_v9 }
 0x6a9   : > { %v1355_v63 = vsel %vm960_vm11, %v1351_v62, 0.0 }
 0x6aa   : > { %1356 = vadd.xlane.f32.xlu2 %v1355_v63 }
 0x715   : > { %v1354_v6 = vpop.xlane.xlu0 %1353 }
 0x716   : > { %v1365_v10 = vmul.f32 %v2553_v8, %v1354_v6 }
 0x718   : > { %v1367_v11 = vsub.f32 %v1350_v58, %v1365_v10 }
 0x71a   : > { %v1369_v9 = vmul.f32 %v1367_v11, %v1367_v11 }
 0x71c   : > { %v1371_v13 = vsel %vm960_vm11, %v1369_v9, 0.0 }
 0x71d   : > { %v1357_v14 = vpop.xlane.xlu2 %1356  ;;  %1372 = vadd.xlane.f32.xlu1 %v1371_v13 }
 0x71e   : > { %v1366_v16 = vmul.f32 %v2553_v8, %v1357_v14 }
 0x720   : > { %v1368_v12 = vsub.f32 %v1351_v62, %v1366_v16 }
 0x722   : > { %v1370_v15 = vmul.f32 %v1368_v12, %v1368_v12 }
 0x724   : > { %v1374_v17 = vsel %vm960_vm11, %v1370_v15, 0.0 }
 0x725   : > { %1375 = vadd.xlane.f32.xlu0 %v1374_v17 }
 0x790   : > { %v1373_v19 = vpop.xlane.xlu1 %1372 }
 0x791   : > { %v1377_v20 = vmul.f32 %v1373_v19, %v2553_v8 }
 0x793   : > { %v1379_v22 = vadd.f32 1e-12, %v1377_v20 }
 0x795   : > { %2184 = vrsqrt.f32 %v1379_v22  ;;  %vm1387_vm1 = vweird.f32 %v1379_v22 }
 0x798   : > { %v1376_v23 = vpop.xlane.xlu0 %1375 }
 0x799   : > { %v1378_v24 = vmul.f32 %v1376_v23, %v2553_v8 }
 0x79b   : > { %v2185_v25 = vpop.eup %2184  ;;  %v1380_v26 = vadd.f32 1e-12, %v1378_v24 }
 0x79c   : > { %v1382_v27 = vmul.f32 %v2185_v25, %v1379_v22  ;;  %vm1388_vm0 = vweird.f32 %v2185_v25 }
 0x79d   : > { %2186 = vrsqrt.f32 %v1380_v26  ;;  %vm1389_vm2 = vmor %vm1387_vm1, %vm1388_vm0  ;;  %vm1397_vm4 = vweird.f32 %v1380_v26 }
 0x79e   : > { %v1383_v28 = vmul.f32 %v2185_v25, %v1382_v27 }
 0x7a0   : > { %v1384_v29 = vmul.f32 0.5, %v1383_v28 }
 0x7a2   : > { %v1385_v30 = vsub.f32 1.5, %v1384_v29 }
 0x7a3   : > { %v2187_v31 = vpop.eup %2186 }
 0x7a4   : > { %v1386_v32 = vmul.f32 %v2185_v25, %v1385_v30  ;;  %v1392_v33 = vmul.f32 %v2187_v31, %v1380_v26  ;;  %vm1398_vm3 = vweird.f32 %v2187_v31 }
 0x7a5   : > { %vm1399_vm5 = vmor %vm1397_vm4, %vm1398_vm3 }
 0x7a6   : > { %v1393_v34 = vmul.f32 %v2187_v31, %v1392_v33  ;;  %v1390_v35 = vsel %vm1389_vm2, %v2185_v25, %v1386_v32 }
 0x7a7   : > { %v1401_v39 = vmul.f32 %v1390_v35, %v1367_v11 }
 0x7a8   : > { %v1394_v36 = vmul.f32 0.5, %v1393_v34 }
 0x7a9   : > { %v1404_v43 = vmul.f32 %v1403_v38, %v1401_v39 }
 0x7aa   : > { %v1395_v37 = vsub.f32 1.5, %v1394_v36 }
 0x7ab   : > { %v1407_v46 = vadd.f32 %v1406_v42, %v1404_v43 }
 0x7ac   : > { %v1396_v40 = vmul.f32 %v2187_v31, %v1395_v37 }
 0x7ae   : > { %v1400_v41 = vsel %vm1399_vm5, %v2187_v31, %v1396_v40 }
 0x7af   : > { %v1402_v44 = vmul.f32 %v1400_v41, %v1368_v12  ;;  %v1474_v12 = vperm.slane %v2469_v7, 4 }
 0x7b1   : > { %v1405_v45 = vmul.f32 %v1403_v38, %v1402_v44 }
 0x7b3   : > { %v1408_v47 = vadd.f32 %v1406_v42, %v1405_v45 }
 0x7b5   : > { %v1409_v48 = vpack.c.bf16 %v1408_v47, %v1407_v46 }
 0x7b7   : > { %2004 = vmatmul.msk.bf16.vlgmr.msra.gmra.mxu1 %vm960_vm11, %v1409_v48  ;;  %v1563_v48 = vperm.slane %v2469_v7, 7 }
 0x834   : > { %v1442_v54 = vpop.f32.mrf.mxu1 }
 0x835   : > { %v1443_v55 = vadd.f32 %v2148_v52, %v1442_v54 }
 0x837   : > { %v1447_v56 = vmul.f32 %v1443_v55, %v1443_v55 }
 0x839   : > { %v1449_v57 = vmul.f32 %v1447_v56, %v1443_v55 }
 0x83b   : > { %v1451_v58 = vmul.f32 0.044715, %v1449_v57 }
 0x83c   : > { %v1444_v59 = vpop.f32.mrf.mxu1 }
 0x83d   : > { %v1453_v60 = vadd.f32 %v1451_v58, %v1443_v55  ;;  %v1445_v61 = vadd.f32 %v2148_v52, %v1444_v59 }
 0x83f   : > { %v1455_v62 = vmul.f32 0.7978846, %v1453_v60  ;;  %v1448_v63 = vmul.f32 %v1445_v61, %v1445_v61 }
 0x841   : > { %v1450_v0 = vmul.f32 %v1448_v63, %v1445_v61  ;;  %2188 = vtanh.f32 %v1455_v62 }
 0x843   : > { %v1452_v1 = vmul.f32 0.044715, %v1450_v0 }
 0x845   : > { %v1454_v2 = vadd.f32 %v1452_v1, %v1445_v61 }
 0x847   : > { %v1456_v3 = vmul.f32 0.7978846, %v1454_v2  ;;  %v2189_v4 = vpop.eup %2188 }
 0x848   : > { %v1459_v5 = vadd.f32 1.0, %v2189_v4 }
 0x849   : > { %2190 = vtanh.f32 %v1456_v3 }
 0x84a   : > { %v1461_v10 = vmul.f32 0.5, %v1459_v5 }
 0x84c   : > { %v1463_v13 = vmul.f32 %v1461_v10, %v1443_v55 }
 0x84f   : > { %v2191_v6 = vpop.eup %2190 }
 0x850   : > { %v1460_v11 = vadd.f32 1.0, %v2191_v6 }
 0x852   : > { %v1462_v9 = vmul.f32 0.5, %v1460_v11 }
 0x854   : > { %v1464_v14 = vmul.f32 %v1462_v9, %v1445_v61 }
 0x856   : > { %v1465_v16 = vpack.c.bf16 %v1464_v14, %v1463_v13 }
 0x858   : > { %2021 = vmatmul.msk.bf16.vlgmr.msra.gmra.mxu3 %vm1499_vm6, %v1465_v16 }
 0x8db   : > { %v1512_v15 = vpop.f32.mrf.mxu3 }
 0x8dc   : > { %v1513_v17 = vadd.f32 %v1512_v15, %v1474_v12 }
 0x8de   : > { %v1517_v18 = vadd.f32 %v1513_v17, %v1407_v46 }
 0x8e0   : > { %v1519_v19 = vsel %vm960_vm11, %v1517_v18, 0.0 }
 0x8e1   : > { %1520 = vadd.xlane.f32.xlu0 %v1519_v19 }
 0x8e3   : > { %v1514_v20 = vpop.f32.mrf.mxu3 }
 0x8e4   : > { %v1515_v21 = vadd.f32 %v1514_v20, %v1474_v12 }
 0x8e6   : > { %v1518_v22 = vadd.f32 %v1515_v21, %v1408_v47 }
 0x8e8   : > { %v1522_v23 = vsel %vm960_vm11, %v1518_v22, 0.0 }
 0x8e9   : > { %1523 = vadd.xlane.f32.xlu0 %v1522_v23 }
 0x954   : > { %v1521_v24 = vpop.xlane.xlu0 %1520 }
 0x955   : > { %v1525_v25 = vmul.f32 %v1521_v24, %v2553_v8 }
 0x957   : > { %v1527_v26 = vsub.f32 %v1517_v18, %v1525_v25 }
 0x959   : > { %v1529_v27 = vmul.f32 %v1527_v26, %v1527_v26 }
 0x95b   : > { %v1531_v28 = vsel %vm960_vm11, %v1529_v27, 0.0 }
 0x95c   : > { %1532 = vadd.xlane.f32.xlu0 %v1531_v28  ;;  %v1524_v29 = vpop.xlane.xlu0 %1523 }
 0x95d   : > { %v1526_v30 = vmul.f32 %v1524_v29, %v2553_v8 }
 0x95f   : > { %v1528_v31 = vsub.f32 %v1518_v22, %v1526_v30 }
 0x961   : > { %v1530_v32 = vmul.f32 %v1528_v31, %v1528_v31 }
 0x963   : > { %v1534_v33 = vsel %vm960_vm11, %v1530_v32, 0.0 }
 0x964   : > { %1535 = vadd.xlane.f32.xlu0 %v1534_v33 }
 0x9cf   : > { %v1533_v34 = vpop.xlane.xlu0 %1532 }
 0x9d0   : > { %v1537_v35 = vmul.f32 %v1533_v34, %v2553_v8 }
 0x9d2   : > { %v1539_v36 = vadd.f32 1e-12, %v1537_v35 }
 0x9d4   : > { %2192 = vrsqrt.f32 %v1539_v36  ;;  %vm1547_vm8 = vweird.f32 %v1539_v36 }
 0x9d7   : > { %v1536_v37 = vpop.xlane.xlu0 %1535 }
 0x9d8   : > { %v1538_v38 = vmul.f32 %v1536_v37, %v2553_v8 }
 0x9da   : > { %v2193_v39 = vpop.eup %2192  ;;  %v1540_v40 = vadd.f32 1e-12, %v1538_v38 }
 0x9db   : > { %v1542_v41 = vmul.f32 %v2193_v39, %v1539_v36  ;;  %vm1548_vm7 = vweird.f32 %v2193_v39 }
 0x9dc   : > { %2194 = vrsqrt.f32 %v1540_v40  ;;  %vm1549_vm9 = vmor %vm1547_vm8, %vm1548_vm7  ;;  %vm1557_vm12 = vweird.f32 %v1540_v40 }
 0x9dd   : > { %v1543_v42 = vmul.f32 %v2193_v39, %v1542_v41 }
 0x9df   : > { %v1544_v43 = vmul.f32 0.5, %v1543_v42 }
 0x9e1   : > { %v1545_v44 = vsub.f32 1.5, %v1544_v43 }
 0x9e2   : > { %v2195_v45 = vpop.eup %2194 }
 0x9e3   : > { %v1546_v46 = vmul.f32 %v2193_v39, %v1545_v44  ;;  %v1552_v47 = vmul.f32 %v2195_v45, %v1540_v40  ;;  %vm1558_vm10 = vweird.f32 %v2195_v45 }
 0x9e4   : > { %vm1559_vm13 = vmor %vm1557_vm12, %vm1558_vm10 }
 0x9e5   : > { %v1550_v49 = vsel %vm1549_vm9, %v2193_v39, %v1546_v46  ;;  %v1553_v50 = vmul.f32 %v2195_v45, %v1552_v47 }
 0x9e6   : > { %v1561_v8 = vmul.f32 %v1550_v49, %v1527_v26 }
 0x9e7   : > { %v1554_v52 = vmul.f32 0.5, %v1553_v50 }
 0x9e8   : > { %v1564_v53 = vmul.f32 %v1563_v48, %v1561_v8 }
 0x9e9   : > { %v1555_v54 = vsub.f32 1.5, %v1554_v52 }
 0x9ea   : > { %v1567_v55 = vadd.f32 %v2149_v51, %v1564_v53 }
 0x9eb   : > { %v1556_v56 = vmul.f32 %v2195_v45, %v1555_v54 }
 0x9ec   : > { %1569 = vst.msk [vmem:[#allocation2] sm:$0xff] %vm960_vm11, %v1567_v55 }
 0x9ed   : > { %v1560_v57 = vsel %vm1559_vm13, %v2195_v45, %v1556_v56 }
 0x9ee   : > { %v1562_v58 = vmul.f32 %v1560_v57, %v1528_v31 }
 0x9f0   : > { %v1565_v59 = vmul.f32 %v1563_v48, %v1562_v58  ;;  %1574 = sbr.rel (%p2022_p8) target bundleno = 2828 (0xb0c), region = 84 }
 0x9f2   : > { %v1568_v60 = vadd.f32 %v2149_v51, %v1565_v59 }
 0x9f4   : > { %1570 = vst.msk [vmem:[#allocation2 + $0x8] sm:$0xff] %vm960_vm11, %v1568_v60 }
 0x9f5   : > { %v2063_v7 = vld [vmem:[%s2430_s29 + $0x8] sm:$0xff]  ;;  %v1576_v61 = vrot.slane %v1568_v60, 7  ;;  %vm1578_vm14 = vcmask 1040384   ;;  %v2062_v62 = vld [vmem:[%s2430_s29] sm:$0xff]  ;;  %vm1655_vm15 = vcmask 123904  }
 0x9f6   : > { %1610 = vmatpush.bf16.msra.mxu0 %v2063_v7  ;;  %v2065_v1 = vld [vmem:[%s2439_s2 + $0x8] sm:$0xff]  ;;  %v2064_v2 = vld [vmem:[%s2439_s2] sm:$0xff] }
 0x9f7   : > { %v1579_v63 = vsel %vm1578_vm14, %v1567_v55, %v1576_v61  ;;  %1648 = vmatpush.bf16.msra.mxu1 %v2065_v1  ;;  %v2196_v3 = vld [vmem:[%s791_s3] ss:$0 sm:$0xff] }
 0x9f8   : > { %v1580_v0 = vpack.c.bf16 %v1579_v63, %v1579_v63  ;;  %v2197_v9 = vld [vmem:[%s799_s7] ss:$0 sm:$0xff] }
 0x9fa   : > { %1611 = vmatpush.bf16.msra.mxu0 %v2062_v62 }
 0x9fb   : > { %1649 = vmatpush.bf16.msra.mxu1 %v2064_v2 }
 0x9fd   : > { %2031 = vmatmul.msk.bf16.vlgmr.msra.gmra.mxu0 %vm960_vm11, %v1580_v0 }
 0xa7a   : > { %v1613_v4 = vpop.f32.mrf.mxu0 }
 0xa7b   : > { %v1614_v5 = vadd.f32 %v2196_v3, %v1613_v4 }
 0xa7d   : > { %2198 = vtanh.f32 %v1614_v5 }
 0xa82   : > { %v1615_v6 = vpop.f32.mrf.mxu0 }
 0xa83   : > { %v2199_v10 = vpop.eup %2198 }
 0xa84   : > { %v1618_v11 = vpack.c.bf16 %v2199_v10, %v2199_v10 }
 0xa86   : > { %2040 = vmatmul.msk.bf16.vlgmr.msra.gmra.mxu1 %vm960_vm11, %v1618_v11 }
 0xb03   : > { %v1651_v13 = vpop.f32.mrf.mxu1 }
 0xb04   : > { %v1652_v14 = vadd.f32 %v2197_v9, %v1651_v13 }
 0xb06   : > { %1656 = vst.msk [vmem:[%s2448_s8] sm:$0x3] %vm1655_vm15, %v1652_v14 }
 0xb0b   : > { %v1653_v16 = vpop.f32.mrf.mxu1 }
 0xb0c PF: > { %s2681_s3 = sld [smem:[#allocation6_spill]] }
 0xb0d   : > { %s2682_s29 = sld [smem:[#allocation4_spill]] }
 0xb0e   : > { %s2683_s30 = sld [smem:[#allocation5_spill]] }
 0xb0f   : > { %s2684_s15 = sld [smem:[#allocation7_spill]] }
 0xb10   : > { %s2685_s16 = sld [smem:[#allocation8_spill]] }
 0xb12   : > { %s24_s17 = sadd.s32 1, %s2681_s3  }
 0xb13   : > { %p21_p9 = scmp.ge.s32.totalorder %s24_s17, 6  }
 0xb15   :  { %23 = sbr.rel (!%p21_p9) target bundleno = 12 (0xc), region = 153 }

</bundles_post_ra>
